<compile_context>
chip_gen: v7x
topology: tpu7x:2x2x1
jax: 0.10.0
libtpu: 0.0.40
codegen_flags: <defaults>
</compile_context>

<pallas_src>
import functools

import jax
import jax.numpy as jnp
from jax.experimental import pallas as pl
from jax.experimental.pallas import tpu as pltpu

P_DROP = 0.1
KEEP_THRESHOLD = int(P_DROP * (2 ** 32))   # drop iff hash_bits < threshold  (p ~= 0.1)
DROP_SCALE = 1.0 / (1.0 - P_DROP)


def _mix32(x):
    """32-bit avalanche hash (lowbias32-style finalizer) on uint32 values."""
    x = x ^ (x >> 16)
    x = x * jnp.uint32(0x7FEB352D)
    x = x ^ (x >> 15)
    x = x * jnp.uint32(0x846CA68B)
    x = x ^ (x >> 16)
    return x


def ffn_kernel(seed_ref, x_ref, w1_ref, b1_ref, w2_ref, b2_ref, o_ref, *, apply_dropout):
    """One row tile of the fused FFN: o = dropout(relu(x@W1 + b1) @ W2 + b2).

    W1/W2/b1/b2 are VMEM-resident (constant index maps); x/o are streamed (TB, D) tiles.
    bf16 MXU operands with f32 accumulation; bias/ReLU/dropout epilogue stays f32.
    """
    i = pl.program_id(0)                      # row-tile index (top level only)

    x = x_ref[...].astype(jnp.bfloat16)                                       # (TB, D)
    h = jnp.dot(x, w1_ref[...], preferred_element_type=jnp.float32)           # (TB, dF)
    h = jnp.maximum(h + b1_ref[...], 0.0)
    y = jnp.dot(h.astype(jnp.bfloat16), w2_ref[...],
                preferred_element_type=jnp.float32)                           # (TB, D)
    y = y + b2_ref[...]

    if apply_dropout:
        # Counter-based dropout: hash(global element index, seed).  Deterministic for a
        # given seed regardless of tiling; pure VPU uint32 ops (portable + cheap epilogue).
        tb, d = y.shape
        rows = jax.lax.broadcasted_iota(jnp.int32, (tb, d), 0).astype(jnp.uint32)
        cols = jax.lax.broadcasted_iota(jnp.int32, (tb, d), 1).astype(jnp.uint32)
        row0 = i.astype(jnp.uint32) * jnp.uint32(tb)
        gidx = (row0 + rows) * jnp.uint32(d) + cols        # unique per element (B*D < 2^32)
        seed_mix = _mix32(seed_ref[0].astype(jnp.uint32) * jnp.uint32(0x9E3779B1))
        bits = _mix32(gidx ^ seed_mix)
        y = jnp.where(bits >= jnp.uint32(KEEP_THRESHOLD), y * DROP_SCALE, 0.0)

    o_ref[...] = y.astype(o_ref.dtype)


def feedforward(x, w1, b1, w2, b2, seed, *, tb=256, training=True):
    """x: (B, D) f32; w1: (D, dF); b1: (1, dF); w2: (dF, D); b2: (1, D); seed: (1,) i32.

    Weights are the PyTorch fc weights transposed to [in, out] layout."""
    B, D = x.shape
    dF = w1.shape[1]

    # ---- Row tiling: prefer a tile that divides B (avoids a host-side pad pass). ----
    tb = min(tb, B)
    if B >= 8:
        tb = max(8, (tb // 8) * 8)
        t = tb
        while t >= 8 and B % t != 0:
            t -= 8
        if t >= 8:
            tb = t
    B_pad = -(-B // tb) * tb
    if B_pad != B:
        # TODO(synk): mask the ragged tail in-kernel instead of this extra HBM pad pass.
        x = jnp.pad(x, ((0, B_pad - B), (0, 0)))
    nb = B_pad // tb

    # Weights become bf16 MXU operands (cast once here); x is cast inside the kernel.
    w1_bf = w1.astype(jnp.bfloat16)
    w2_bf = w2.astype(jnp.bfloat16)
    b1_f = b1.astype(jnp.float32)
    b2_f = b2.astype(jnp.float32)

    # ---- VMEM budget: resident weights (x2 pipeline bufs) + streamed x/out tiles + temps. ----
    weight_vmem = 2 * (2 * (w1_bf.size + w2_bf.size)) + 2 * 4 * (b1_f.size + b2_f.size)
    io_vmem = 2 * (tb * D * 4) + 2 * (tb * D * 4)          # x f32 + out f32, double-buffered
    act_vmem = tb * dF * 4 + 2 * tb * D * 4                # hidden + epilogue temporaries
    vmem_need = weight_vmem + io_vmem + act_vmem
    # TODO(synk): weight sets > ~48 MiB need a hidden-chunk-streamed variant instead.
    assert vmem_need <= 56 * 1024 * 1024, (
        "resident-weight FFN working set does not fit VMEM; use a streamed variant")
    try:
        vmem_cap = pltpu.get_tpu_info().vmem_capacity_bytes
    except Exception:
        vmem_cap = 64 * 1024 * 1024            # assume the smallest generation (v7x)
    vmem_limit = int(min(max(vmem_need + (8 << 20), 32 << 20), int(0.9 * vmem_cap)))

    cost = pl.CostEstimate(
        flops=4 * B_pad * D * dF,                           # two matmuls
        transcendentals=0,
        bytes_accessed=(x.size * 4                          # x read once (f32)
                        + 2 * (w1_bf.size + w2_bf.size)     # weights read once (bf16)
                        + 4 * (b1_f.size + b2_f.size)
                        + B_pad * D * 4),                   # output written once (f32)
    )

    kernel = functools.partial(ffn_kernel, apply_dropout=training)

    out = pl.pallas_call(
        kernel,
        out_shape=jax.ShapeDtypeStruct((B_pad, D), jnp.float32),
        grid_spec=pltpu.PrefetchScalarGridSpec(
            num_scalar_prefetch=1,                          # seed -> SMEM before the grid
            grid=(nb,),
            in_specs=[
                pl.BlockSpec((tb, D), lambda i, s: (i, 0)),   # x row tile (streamed)
                pl.BlockSpec((D, dF), lambda i, s: (0, 0)),   # W1 (VMEM-resident)
                pl.BlockSpec((1, dF), lambda i, s: (0, 0)),   # b1 (resident)
                pl.BlockSpec((dF, D), lambda i, s: (0, 0)),   # W2 (resident)
                pl.BlockSpec((1, D), lambda i, s: (0, 0)),    # b2 (resident)
            ],
            out_specs=pl.BlockSpec((tb, D), lambda i, s: (i, 0)),
        ),
        compiler_params=pltpu.CompilerParams(
            dimension_semantics=("parallel",),              # row tiles shard across TCs
            vmem_limit_bytes=vmem_limit,
        ),
        cost_estimate=cost,
    )(seed, x, w1_bf, b1_f, w2_bf, b2_f)

    return out[:B] if B_pad != B else out


if __name__ == "__main__":
    # Small, lane-aligned shapes consistent with the module (dF = 256 from the spec).
    B, D, dF = 256, 128, 256

    key = jax.random.PRNGKey(0)
    kx, kw1, kb1, kw2, kb2 = jax.random.split(key, 5)

    # PyTorch nn.Linear default init: U(-1/sqrt(fan_in), +1/sqrt(fan_in)).
    bound1 = 1.0 / (D ** 0.5)
    bound2 = 1.0 / (dF ** 0.5)
    x = jax.random.normal(kx, (B, D), dtype=jnp.float32)
    w1 = jax.random.uniform(kw1, (D, dF), jnp.float32, -bound1, bound1)   # fc1.weight.T
    b1 = jax.random.uniform(kb1, (1, dF), jnp.float32, -bound1, bound1)   # fc1.bias
    w2 = jax.random.uniform(kw2, (dF, D), jnp.float32, -bound2, bound2)   # fc2.weight.T
    b2 = jax.random.uniform(kb2, (1, D), jnp.float32, -bound2, bound2)    # fc2.bias
    seed = jnp.array([1234], dtype=jnp.int32)

    out = feedforward(x, w1, b1, w2, b2, seed, tb=256)            # training mode (dropout on)
    jax.block_until_ready(out)
    assert out.shape == (B, D) and out.dtype == jnp.float32

    ref = jnp.maximum(x @ w1 + b1, 0.0) @ w2 + b2                 # f32 pre-dropout reference
    tol = 5e-2 * (1.0 + jnp.abs(ref))

    # Eval mode must match the reference FFN (up to bf16-MXU rounding).
    out_eval = feedforward(x, w1, b1, w2, b2, seed, tb=256, training=False)
    jax.block_until_ready(out_eval)
    assert bool(jnp.all(jnp.abs(out_eval - ref) <= tol)), "eval-mode output deviates"

    # Training mode: kept elements, rescaled by (1-p), must match the reference; the
    # dropped fraction must be close to p.
    kept = out != 0.0
    err = jnp.abs(jnp.where(kept, out * (1.0 - P_DROP), ref) - ref)
    assert bool(jnp.all(err <= tol)), "kept elements deviate from the reference FFN"
    drop_frac = 1.0 - jnp.mean(kept.astype(jnp.float32))
    assert 0.05 <= float(drop_frac) <= 0.15, f"dropout rate {drop_frac} far from {P_DROP}"

    print("KERNEL_OK")
</pallas_src>

<mosaic_0001>
module attributes {stable_mosaic.version = 11 : i64} {
  func.func @ffn_kernel(%arg0: i32, %arg1: memref<1xi32, #tpu.memory_space<smem>>, %arg2: memref<256x128xf32, #tpu.memory_space<vmem>>, %arg3: memref<128x256xbf16, #tpu.memory_space<vmem>>, %arg4: memref<1x256xf32, #tpu.memory_space<vmem>>, %arg5: memref<256x128xbf16, #tpu.memory_space<vmem>>, %arg6: memref<1x128xf32, #tpu.memory_space<vmem>>, %arg7: memref<256x128xf32, #tpu.memory_space<vmem>>) attributes {dimension_semantics = [#tpu.dimension_semantics<parallel>], iteration_bounds = array<i64: 1>, scalar_prefetch = 1 : i64, scratch_operands = 0 : i64, tpu.core_type = #tpu.core_type<tc>, window_params = [{transform_indices = @transform_0, window_bounds = array<i64: 256, 128>}, {pipeline_mode = #tpu.pipeline_mode<synchronous>, transform_indices = @transform_1, window_bounds = array<i64: 128, 256>}, {pipeline_mode = #tpu.pipeline_mode<synchronous>, transform_indices = @transform_2, window_bounds = array<i64: 1, 256>}, {pipeline_mode = #tpu.pipeline_mode<synchronous>, transform_indices = @transform_3, window_bounds = array<i64: 256, 128>}, {pipeline_mode = #tpu.pipeline_mode<synchronous>, transform_indices = @transform_4, window_bounds = array<i64: 1, 128>}, {transform_indices = @transform_5, window_bounds = array<i64: 256, 128>}]} {
    %c0 = arith.constant 0 : index
    %c0_0 = arith.constant 0 : index
    %0 = vector.load %arg2[%c0, %c0_0] : memref<256x128xf32, #tpu.memory_space<vmem>>, vector<256x128xf32>
    %1 = arith.truncf %0 : vector<256x128xf32> to vector<256x128xbf16>
    %c0_1 = arith.constant 0 : index
    %c0_2 = arith.constant 0 : index
    %2 = vector.load %arg3[%c0_1, %c0_2] : memref<128x256xbf16, #tpu.memory_space<vmem>>, vector<128x256xbf16>
    %cst = arith.constant dense<0.000000e+00> : vector<256x256xf32>
    %3 = tpu.matmul %1, %2, %cst {dimension_numbers = #tpu.dot_dimension_numbers<[1], [0], [0], [1], [0, 0, 1, 1], [], []>} : vector<256x128xbf16>, vector<128x256xbf16>, vector<256x256xf32> -> vector<256x256xf32>
    %c0_3 = arith.constant 0 : index
    %c0_4 = arith.constant 0 : index
    %4 = vector.load %arg4[%c0_3, %c0_4] : memref<1x256xf32, #tpu.memory_space<vmem>>, vector<1x256xf32>
    %5 = vector.broadcast %4 : vector<1x256xf32> to vector<256x256xf32>
    %6 = arith.addf %3, %5 : vector<256x256xf32>
    %cst_5 = arith.constant 0.000000e+00 : f32
    %7 = vector.broadcast %cst_5 : f32 to vector<256x256xf32>
    %8 = arith.maximumf %6, %7 : vector<256x256xf32>
    %9 = arith.truncf %8 : vector<256x256xf32> to vector<256x256xbf16>
    %c0_6 = arith.constant 0 : index
    %c0_7 = arith.constant 0 : index
    %10 = vector.load %arg5[%c0_6, %c0_7] : memref<256x128xbf16, #tpu.memory_space<vmem>>, vector<256x128xbf16>
    %cst_8 = arith.constant dense<0.000000e+00> : vector<256x128xf32>
    %11 = tpu.matmul %9, %10, %cst_8 {dimension_numbers = #tpu.dot_dimension_numbers<[1], [0], [0], [1], [0, 0, 1, 1], [], []>} : vector<256x256xbf16>, vector<256x128xbf16>, vector<256x128xf32> -> vector<256x128xf32>
    %c0_9 = arith.constant 0 : index
    %c0_10 = arith.constant 0 : index
    %12 = vector.load %arg6[%c0_9, %c0_10] : memref<1x128xf32, #tpu.memory_space<vmem>>, vector<1x128xf32>
    %13 = vector.broadcast %12 : vector<1x128xf32> to vector<256x128xf32>
    %14 = arith.addf %11, %13 : vector<256x128xf32>
    %15 = tpu.iota {dimensions = array<i32: 0>} : vector<256x128xi32>
    %16 = tpu.iota {dimensions = array<i32: 1>} : vector<256x128xi32>
    %c256_i32 = arith.constant 256 : i32
    %17 = arith.muli %arg0, %c256_i32 : i32
    %18 = vector.broadcast %17 : i32 to vector<256x128xi32>
    %19 = arith.addi %18, %15 : vector<256x128xi32>
    %c128_i32 = arith.constant 128 : i32
    %20 = vector.broadcast %c128_i32 : i32 to vector<256x128xi32>
    %21 = arith.muli %19, %20 : vector<256x128xi32>
    %22 = arith.addi %21, %16 : vector<256x128xi32>
    %c0_11 = arith.constant 0 : index
    %23 = memref.load %arg1[%c0_11] : memref<1xi32, #tpu.memory_space<smem>>
    %c-1640531535_i32 = arith.constant -1640531535 : i32
    %24 = arith.muli %23, %c-1640531535_i32 : i32
    %c16_i32 = arith.constant 16 : i32
    %25 = arith.shrui %24, %c16_i32 : i32
    %26 = arith.xori %24, %25 : i32
    %c2146121005_i32 = arith.constant 2146121005 : i32
    %27 = arith.muli %26, %c2146121005_i32 : i32
    %c15_i32 = arith.constant 15 : i32
    %28 = arith.shrui %27, %c15_i32 : i32
    %29 = arith.xori %27, %28 : i32
    %c-2073254261_i32 = arith.constant -2073254261 : i32
    %30 = arith.muli %29, %c-2073254261_i32 : i32
    %c16_i32_12 = arith.constant 16 : i32
    %31 = arith.shrui %30, %c16_i32_12 : i32
    %32 = arith.xori %30, %31 : i32
    %33 = vector.broadcast %32 : i32 to vector<256x128xi32>
    %34 = arith.xori %22, %33 : vector<256x128xi32>
    %c16_i32_13 = arith.constant 16 : i32
    %35 = vector.broadcast %c16_i32_13 : i32 to vector<256x128xi32>
    %36 = arith.shrui %34, %35 : vector<256x128xi32>
    %37 = arith.xori %34, %36 : vector<256x128xi32>
    %c2146121005_i32_14 = arith.constant 2146121005 : i32
    %38 = vector.broadcast %c2146121005_i32_14 : i32 to vector<256x128xi32>
    %39 = arith.muli %37, %38 : vector<256x128xi32>
    %c15_i32_15 = arith.constant 15 : i32
    %40 = vector.broadcast %c15_i32_15 : i32 to vector<256x128xi32>
    %41 = arith.shrui %39, %40 : vector<256x128xi32>
    %42 = arith.xori %39, %41 : vector<256x128xi32>
    %c-2073254261_i32_16 = arith.constant -2073254261 : i32
    %43 = vector.broadcast %c-2073254261_i32_16 : i32 to vector<256x128xi32>
    %44 = arith.muli %42, %43 : vector<256x128xi32>
    %c16_i32_17 = arith.constant 16 : i32
    %45 = vector.broadcast %c16_i32_17 : i32 to vector<256x128xi32>
    %46 = arith.shrui %44, %45 : vector<256x128xi32>
    %47 = arith.xori %44, %46 : vector<256x128xi32>
    %c429496729_i32 = arith.constant 429496729 : i32
    %48 = vector.broadcast %c429496729_i32 : i32 to vector<256x128xi32>
    %49 = arith.cmpi uge, %47, %48 : vector<256x128xi32>
    %cst_18 = arith.constant 1.11111116 : f32
    %50 = vector.broadcast %cst_18 : f32 to vector<256x128xf32>
    %51 = arith.mulf %14, %50 : vector<256x128xf32>
    %cst_19 = arith.constant 0.000000e+00 : f32
    %52 = vector.broadcast %cst_19 : f32 to vector<256x128xf32>
    %53 = arith.select %49, %51, %52 : vector<256x128xi1>, vector<256x128xf32>
    %c0_20 = arith.constant 0 : index
    %c0_21 = arith.constant 0 : index
    %54 = vector.load %arg7[%c0_20, %c0_21] : memref<256x128xf32, #tpu.memory_space<vmem>>, vector<256x128xf32>
    tpu.vector_store %arg7[%c0_20, %c0_21], %53 {strides = array<i32>} : memref<256x128xf32, #tpu.memory_space<vmem>>, vector<256x128xf32>,
    return
  }
  func.func @transform_0(%arg0: i32, %arg1: memref<1xi32, #tpu.memory_space<smem>>) -> (i32, i32) {
    %c0_i32 = arith.constant 0 : i32
    %c0_i32_0 = arith.constant 0 : i32
    return %arg0, %c0_i32 : i32, i32
  }
  func.func @transform_1(%arg0: i32, %arg1: memref<1xi32, #tpu.memory_space<smem>>) -> (i32, i32) {
    %c0_i32 = arith.constant 0 : i32
    %c0_i32_0 = arith.constant 0 : i32
    %c0_i32_1 = arith.constant 0 : i32
    return %c0_i32, %c0_i32_0 : i32, i32
  }
  func.func @transform_2(%arg0: i32, %arg1: memref<1xi32, #tpu.memory_space<smem>>) -> (i32, i32) {
    %c0_i32 = arith.constant 0 : i32
    %c0_i32_0 = arith.constant 0 : i32
    %c0_i32_1 = arith.constant 0 : i32
    return %c0_i32, %c0_i32_0 : i32, i32
  }
  func.func @transform_3(%arg0: i32, %arg1: memref<1xi32, #tpu.memory_space<smem>>) -> (i32, i32) {
    %c0_i32 = arith.constant 0 : i32
    %c0_i32_0 = arith.constant 0 : i32
    %c0_i32_1 = arith.constant 0 : i32
    return %c0_i32, %c0_i32_0 : i32, i32
  }
  func.func @transform_4(%arg0: i32, %arg1: memref<1xi32, #tpu.memory_space<smem>>) -> (i32, i32) {
    %c0_i32 = arith.constant 0 : i32
    %c0_i32_0 = arith.constant 0 : i32
    %c0_i32_1 = arith.constant 0 : i32
    return %c0_i32, %c0_i32_0 : i32, i32
  }
  func.func @transform_5(%arg0: i32, %arg1: memref<1xi32, #tpu.memory_space<smem>>) -> (i32, i32) {
    %c0_i32 = arith.constant 0 : i32
    %c0_i32_0 = arith.constant 0 : i32
    return %arg0, %c0_i32 : i32, i32
  }
}

</mosaic_0001>

<bundles_post_ra>
// kernel: tpu_custom_call.1
= control target key start
LH: loop header
LB: loop body
LE: loop exit
PB: predicated region body
PF: predicated region fallthrough
CT: control target
= control target key end

     0   :  { %12 = vsyncpa [#allocation5], 0  ;;  %s2064_s0 = inlined_call_operand.<no memory space> [shape: s32[1], index: 0, kind: input, shape index: {}]   ;;  %s2065_s1 = inlined_call_operand.hbm [shape: f32[256,128], index: 1, kind: input, shape index: {}]   ;;  %s2066_s2 = inlined_call_operand.hbm [shape: bf16[128,256], index: 2, kind: input, shape index: {}]   ;;  %s2067_s3 = inlined_call_operand.vmem [shape: f32[1,256], index: 3, kind: input, shape index: {}]   ;;  %s2068_s4 = inlined_call_operand.hbm [shape: bf16[256,128], index: 4, kind: input, shape index: {}]   ;;  %s2069_s5 = inlined_call_operand.vmem [shape: f32[1,128], index: 5, kind: input, shape index: {}]   ;;  %s2070_s6 = inlined_call_operand.hbm [shape: f32[256,128], index: 6, kind: output, shape index: {}]  }
   0x1   :  { %13 = vsyncpa [#allocation8], 0 }
   0x2   :  { %14 = vsyncpa [#allocation6], 0  ;;  %s1673_s21 = smov [#allocation7]   ;;  %s1674_s23 = smov [#allocation4]  }
   0x3   :  { %s32_s22 = sshll.u32 %s1673_s21, 4  ;;  %s20_s24 = sshll.u32 %s1674_s23, 4  ;;  %s33_s22 = int_to_ptr.vmem [resolvable:$true] %s32_s22  ;;  %s1717_s24 = int_to_ptr.vmem [resolvable:$true] %s20_s24 }
   0x4   :  { %s1579_s27 = scalar_lea.hbm %s2066_s2, 2048 }
   0x5   :  { %p1580_p0 = scmp.ne.s32.totalorder %s2066_s2, %s1579_s27  ;;  %p1583_p1 = scmp.lt.u32.totalorder %s1579_s27, %s2066_s2 }
   0x7   :  { %p1585_p2 = pnand %p1583_p1, %p1580_p0 }
   0x9   :  { %1588 = shalt.err (!%p1585_p2)
}
   0xa   :  { %s1589_s8 = scalar_lea.vmem %s33_s22, 2048  ;;  %p1594_p4 = scmp.lt.s32.totalorder %s33_s22, %s33_s22 }
   0xb   :  { %p1590_p3 = scmp.ne.s32.totalorder %s33_s22, %s1589_s8  ;;  %p1595_p5 = scmp.lt.s32.totalorder %s1589_s8, %s1589_s8 }
   0xd   :  { %p1596_p6 = por %p1595_p5, %p1594_p4 }
   0xf   :  { %p1597_p7 = pnand %p1596_p6, %p1590_p3 }
  0x11   :  { %1600 = shalt.err (!%p1597_p7)
}
  0x12   :  { %s1675_s9 = smov 128   ;;  %s1676_s10 = smov 8  }
  0x13   :  { %38 = dma.hbm_to_vmem [thread:$0]  %s2066_s2, 2048, %s33_s22, [#allocation8], %s1675_s9, %s1675_s9, %s1676_s10  }
  0x14   :  { %s1601_s15 = scalar_lea.hbm %s2065_s1, 4096 }
  0x15   :  { %p1602_p8 = scmp.ne.s32.totalorder %s2065_s1, %s1601_s15  ;;  %p1605_p9 = scmp.lt.u32.totalorder %s1601_s15, %s2065_s1 }
  0x17   :  { %p1607_p10 = pnand %p1605_p9, %p1602_p8 }
  0x19   :  { %1610 = shalt.err (!%p1607_p10)
}
  0x1a   :  { %s1611_s20 = scalar_lea.vmem %s1717_s24, 4096  ;;  %p1616_p12 = scmp.lt.s32.totalorder %s1717_s24, %s1717_s24 }
  0x1b   :  { %p1612_p11 = scmp.ne.s32.totalorder %s1717_s24, %s1611_s20  ;;  %p1617_p13 = scmp.lt.s32.totalorder %s1611_s20, %s1611_s20 }
  0x1d   :  { %p1618_p0 = por %p1617_p13, %p1616_p12 }
  0x1f   :  { %p1619_p1 = pnand %p1618_p0, %p1612_p11 }
  0x21   :  { %1622 = shalt.err (!%p1619_p1)
}
  0x22   :  { %26 = dma.hbm_to_vmem [thread:$0]  %s2065_s1, 4096, %s1717_s24, [#allocation5], %s1675_s9, %s1675_s9, %s1676_s10  }
  0x23   :  { %s1677_s22 = smov [#allocation9]   ;;  %s1623_s27 = scalar_lea.hbm %s2068_s4, 2048 }
  0x24   :  { %s46_s23 = sshll.u32 %s1677_s22, 4  ;;  %p1624_p2 = scmp.ne.s32.totalorder %s2068_s4, %s1623_s27  ;;  %s47_s23 = int_to_ptr.vmem [resolvable:$true] %s46_s23 }
  0x25   :  { %p1627_p3 = scmp.lt.u32.totalorder %s1623_s27, %s2068_s4 }
  0x27   :  { %p1629_p4 = pnand %p1627_p3, %p1624_p2 }
  0x29   :  { %1632 = shalt.err (!%p1629_p4)
}
  0x2a   :  { %s1633_s8 = scalar_lea.vmem %s47_s23, 2048  ;;  %p1638_p6 = scmp.lt.s32.totalorder %s47_s23, %s47_s23 }
  0x2b   :  { %p1634_p5 = scmp.ne.s32.totalorder %s47_s23, %s1633_s8  ;;  %p1639_p7 = scmp.lt.s32.totalorder %s1633_s8, %s1633_s8 }
  0x2d   :  { %p1640_p8 = por %p1639_p7, %p1638_p6 }
  0x2f   :  { %p1641_p9 = pnand %p1640_p8, %p1634_p5 }
  0x31   :  { %1644 = shalt.err (!%p1641_p9)
}
  0x32   :  { %s1678_s1 = smov 64   ;;  %s1679_s24 = smov 4  }
  0x33   :  { %52 = dma.hbm_to_vmem [thread:$0]  %s2068_s4, 2048, %s47_s23, [#allocation8], %s1678_s1, %s1678_s1, %s1679_s24  }
  0x34   :  { %1667 = dma.done.wait [#allocation5], 4096  }
  0x35   :  { %1668 = vsyncadd [#allocation5], 4294963200 }
  0x36   :  { %1669 = dma.done.wait [#allocation8], 4096  }
  0x37   :  { %1670 = vsyncadd [#allocation8], 4294963200  ;;  %v1680_v0 = vmov 0   ;;  %v1538_v1 = vld [vmem:[#allocation7 + $0x4] ss:$8 sps:$4 sm:$0xff]   ;;  %v1566_v24 = vld [vmem:[#allocation9 + $0x50] sm:$0xff]  }
  0x38   :  { %253 = vmatprep.mubr.bf16.mxu0 %v1680_v0  ;;  %v1540_v2 = vld [vmem:[#allocation7] ss:$8 sps:$4 sm:$0xff]   ;;  %221 = vmatprep.subr.bf16.mxu0 %v1538_v1  ;;  %v1541_v3 = vld [vmem:[#allocation7 + $0x14] ss:$8 sps:$4 sm:$0xff]   ;;  %v1543_v4 = vld [vmem:[#allocation7 + $0x10] ss:$8 sps:$4 sm:$0xff]  }
  0x39   :  { %222 = vmatpush1.bf16.msra.mxu0 %v1540_v2  ;;  %v1544_v5 = vld [vmem:[#allocation7 + $0x24] ss:$8 sps:$4 sm:$0xff]   ;;  %v1546_v6 = vld [vmem:[#allocation7 + $0x20] ss:$8 sps:$4 sm:$0xff]   ;;  %v1547_v7 = vld [vmem:[#allocation7 + $0x34] ss:$8 sps:$4 sm:$0xff]  }
  0x3a   :  { %223 = vmatprep.subr.bf16.mxu0 %v1541_v3  ;;  %v1549_v8 = vld [vmem:[#allocation7 + $0x30] ss:$8 sps:$4 sm:$0xff]   ;;  %v1550_v9 = vld [vmem:[#allocation7 + $0x44] ss:$8 sps:$4 sm:$0xff]   ;;  %v1552_v10 = vld [vmem:[#allocation7 + $0x40] ss:$8 sps:$4 sm:$0xff]  }
  0x3b   :  { %v1553_v11 = vld [vmem:[#allocation7 + $0x54] ss:$8 sps:$4 sm:$0xff]   ;;  %v1555_v12 = vld [vmem:[#allocation7 + $0x50] ss:$8 sps:$4 sm:$0xff]   ;;  %v1556_v13 = vld [vmem:[#allocation7 + $0x64] ss:$8 sps:$4 sm:$0xff]  }
  0x3c   :  { %v1558_v14 = vld [vmem:[#allocation7 + $0x60] ss:$8 sps:$4 sm:$0xff]   ;;  %v1559_v15 = vld [vmem:[#allocation7 + $0x74] ss:$8 sps:$4 sm:$0xff]   ;;  %v1561_v19 = vld [vmem:[#allocation7 + $0x70] ss:$8 sps:$4 sm:$0xff]  }
  0x3d   :  { %224 = vmatpush1.bf16.msra.mxu0 %v1543_v4  ;;  %v1562_v16 = vld [vmem:[#allocation9 + $0x40] sm:$0xff]   ;;  %v1564_v18 = vld [vmem:[#allocation9 + $0x48] sm:$0xff]   ;;  %v1567_v25 = vld [vmem:[#allocation9 + $0x10] sm:$0xff]   ;;  %s940_s15 = smul.u32 2654435761, %s2064_s0 }
  0x3e   :  { %225 = vmatprep.subr.bf16.mxu0 %v1544_v5  ;;  %v1563_v17 = vld [vmem:[#allocation9] sm:$0xff]   ;;  %v66_v21 = vld [vmem:[#allocation4 + $0x8] sm:$0xff]  ;;  %1417 = vmatprep.subr.bf16.mxu1 %v1562_v16  ;;  %v1568_v26 = vld [vmem:[#allocation9 + $0x58] sm:$0xff]  }
  0x3f   :  { %v65_v20 = vld [vmem:[#allocation4] sm:$0xff]  ;;  %1418 = vmatpush3.bf16.msra.mxu1 %v1563_v17  ;;  %v1565_v22 = vld [vmem:[#allocation9 + $0x8] sm:$0xff]   ;;  %v67_v27 = vld [vmem:[#allocation4 + $0x10] sm:$0xff]  ;;  %s941_s16 = sshrl.u32 %s940_s15, 16 }
  0x40   :  { %v97_v23 = vpack.c.bf16 %v66_v21, %v65_v20  ;;  %1419 = vmatprep.subr.bf16.mxu1 %v1564_v18  ;;  %v68_v28 = vld [vmem:[#allocation4 + $0x18] sm:$0xff]  ;;  %v1570_v31 = vld [vmem:[#allocation9 + $0x60] sm:$0xff]   ;;  %v1572_v33 = vld [vmem:[#allocation9 + $0x68] sm:$0xff]   ;;  %v131_v18 = vlaneseq  ;;  %s942_s17 = sxor.u32 %s941_s16, %s940_s15 }
  0x41   :  { %226 = vmatpush1.bf16.msra.mxu0 %v1546_v6  ;;  %v1569_v29 = vld [vmem:[#allocation9 + $0x18] sm:$0xff]   ;;  %v98_v30 = vpack.c.bf16 %v68_v28, %v67_v27  ;;  %v1571_v32 = vld [vmem:[#allocation9 + $0x20] sm:$0xff]   ;;  %v70_v35 = vld [vmem:[#allocation4 + $0x28] sm:$0xff]  ;;  %s943_s18 = smul.u32 2146121005, %s942_s17 }
  0x42   :  { %227 = vmatprep.subr.bf16.mxu0 %v1547_v7  ;;  %v69_v34 = vld [vmem:[#allocation4 + $0x20] sm:$0xff]  ;;  %v71_v37 = vld [vmem:[#allocation4 + $0x30] sm:$0xff]  ;;  %v72_v38 = vld [vmem:[#allocation4 + $0x38] sm:$0xff] }
  0x43   :  { %1420 = vmatpush3.bf16.msra.mxu1 %v1565_v22  ;;  %v99_v36 = vpack.c.bf16 %v70_v35, %v69_v34  ;;  %v100_v39 = vpack.c.bf16 %v72_v38, %v71_v37  ;;  %v73_v40 = vld [vmem:[#allocation4 + $0x40] sm:$0xff]  ;;  %v74_v41 = vld [vmem:[#allocation4 + $0x48] sm:$0xff]  ;;  %v75_v43 = vld [vmem:[#allocation4 + $0x50] sm:$0xff]  ;;  %s944_s19 = sshrl.u32 %s943_s18, 15 }
  0x44   :  { %1421 = vmatprep.subr.bf16.mxu1 %v1566_v24  ;;  %v101_v42 = vpack.c.bf16 %v74_v41, %v73_v40  ;;  %v76_v44 = vld [vmem:[#allocation4 + $0x58] sm:$0xff]  ;;  %v77_v46 = vld [vmem:[#allocation4 + $0x60] sm:$0xff]  ;;  %v78_v47 = vld [vmem:[#allocation4 + $0x68] sm:$0xff]  ;;  %s945_s20 = sxor.u32 %s944_s19, %s943_s18 }
  0x45   :  { %228 = vmatpush1.bf16.msra.mxu0 %v1549_v8  ;;  %v102_v45 = vpack.c.bf16 %v76_v44, %v75_v43  ;;  %v103_v48 = vpack.c.bf16 %v78_v47, %v77_v46  ;;  %v79_v49 = vld [vmem:[#allocation4 + $0x70] sm:$0xff]  ;;  %v80_v50 = vld [vmem:[#allocation4 + $0x78] sm:$0xff]  ;;  %v81_v52 = vld [vmem:[#allocation4 + $0x80] sm:$0xff]  ;;  %s946_s2 = smul.u32 2221713035, %s945_s20 }
  0x46   :  { %229 = vmatprep.subr.bf16.mxu0 %v1550_v9  ;;  %v104_v51 = vpack.c.bf16 %v80_v50, %v79_v49  ;;  %v82_v53 = vld [vmem:[#allocation4 + $0x88] sm:$0xff]  ;;  %v83_v55 = vld [vmem:[#allocation4 + $0x90] sm:$0xff]  ;;  %v84_v56 = vld [vmem:[#allocation4 + $0x98] sm:$0xff] }
  0x47   :  { %1422 = vmatpush3.bf16.msra.mxu1 %v1567_v25  ;;  %v105_v54 = vpack.c.bf16 %v82_v53, %v81_v52  ;;  %v106_v57 = vpack.c.bf16 %v84_v56, %v83_v55  ;;  %v85_v58 = vld [vmem:[#allocation4 + $0xa0] sm:$0xff]  ;;  %v86_v59 = vld [vmem:[#allocation4 + $0xa8] sm:$0xff]  ;;  %v87_v61 = vld [vmem:[#allocation4 + $0xb0] sm:$0xff]  ;;  %s947_s21 = sshrl.u32 %s946_s2, 16 }
  0x48   :  { %1423 = vmatprep.subr.bf16.mxu1 %v1568_v26  ;;  %v107_v60 = vpack.c.bf16 %v86_v59, %v85_v58  ;;  %v88_v62 = vld [vmem:[#allocation4 + $0xb8] sm:$0xff]  ;;  %v1573_v63 = vld [vmem:[#allocation9 + $0x28] sm:$0xff]   ;;  %v1574_v2 = vld [vmem:[#allocation9 + $0x70] sm:$0xff]   ;;  %s948_s22 = sxor.u32 %s947_s21, %s946_s2 }
  0x49   :  { %230 = vmatpush1.bf16.msra.mxu0 %v1552_v10  ;;  %v108_v1 = vpack.c.bf16 %v88_v62, %v87_v61  ;;  %v1575_v3 = vld [vmem:[#allocation9 + $0x30] sm:$0xff]   ;;  %v1576_v4 = vld [vmem:[#allocation9 + $0x78] sm:$0xff]   ;;  %v89_v5 = vld [vmem:[#allocation4 + $0xc0] sm:$0xff] }
  0x4a   :  { %231 = vmatprep.subr.bf16.mxu0 %v1553_v11  ;;  %v90_v6 = vld [vmem:[#allocation4 + $0xc8] sm:$0xff]  ;;  %v1577_v7 = vld [vmem:[#allocation9 + $0x38] sm:$0xff]   ;;  %v91_v9 = vld [vmem:[#allocation4 + $0xd0] sm:$0xff] }
  0x4b   :  { %1424 = vmatpush3.bf16.msra.mxu1 %v1569_v29  ;;  %v109_v8 = vpack.c.bf16 %v90_v6, %v89_v5  ;;  %v92_v10 = vld [vmem:[#allocation4 + $0xd8] sm:$0xff]  ;;  %v129_v21 = vld [vmem:[%s2067_s3] sm:$0x3] }
  0x4c   :  { %1425 = vmatprep.subr.bf16.mxu1 %v1570_v31  ;;  %v110_v11 = vpack.c.bf16 %v92_v10, %v91_v9  ;;  %v96_v16 = vld [vmem:[#allocation4 + $0xf8] sm:$0xff] }
  0x4d   :  { %232 = vmatpush1.bf16.msra.mxu0 %v1555_v12  ;;  %v93_v12 = vld [vmem:[#allocation4 + $0xe0] sm:$0xff] }
  0x4e   :  { %233 = vmatprep.subr.bf16.mxu0 %v1556_v13  ;;  %v94_v13 = vld [vmem:[#allocation4 + $0xe8] sm:$0xff] }
  0x4f   :  { %1426 = vmatpush3.bf16.msra.mxu1 %v1571_v32 }
  0x50   :  { %1427 = vmatprep.subr.bf16.mxu1 %v1572_v33 }
  0x51   :  { %234 = vmatpush1.bf16.msra.mxu0 %v1558_v14  ;;  %v111_v14 = vpack.c.bf16 %v94_v13, %v93_v12 }
  0x52   :  { %235 = vmatprep.subr.bf16.mxu0 %v1559_v15  ;;  %v95_v15 = vld [vmem:[#allocation4 + $0xf0] sm:$0xff] }
  0x53   :  { %1428 = vmatpush3.bf16.msra.mxu1 %v1573_v63  ;;  %v112_v17 = vpack.c.bf16 %v96_v16, %v95_v15 }
  0x54   :  { %1429 = vmatprep.subr.bf16.mxu1 %v1574_v2 }
  0x55   :  { %236 = vmatpush1.bf16.msra.mxu0 %v1561_v19  ;;  %v1783_v19 = vshrl.u32 %v131_v18, 7 }
  0x57   :  { %1430 = vmatpush3.bf16.msra.mxu1 %v1575_v3  ;;  %v133_v20 = vsub.s32 0, %v1783_v19  ;;  %v137_v22 = vsub.s32 1, %v1783_v19 }
  0x58   :  { %254 = vmatmul.mubr.bf16.vlgmr.msra.gmra.mrb[0].mxu0 %v97_v23  ;;  %1431 = vmatprep.subr.bf16.mxu1 %v1576_v4 }
  0x59   :  { %263 = vmatprep.mubr.bf16.mxu0 %v1680_v0  ;;  %v1790_v23 = vrot.slane %v129_v21, %v133_v20  ;;  %v1792_v24 = vrot.slane %v129_v21, %v137_v22 }
  0x5b   :  { %1432 = vmatpush3.bf16.msra.mxu1 %v1577_v7 }
  0x60   :  { %264 = vmatmul.mubr.bf16.gmra.mrb[4].mxu0 %v98_v30 }
  0x61   :  { %273 = vmatprep.mubr.bf16.mxu0 %v1680_v0 }
  0x68   :  { %274 = vmatmul.mubr.bf16.gmra.mrb[8].mxu0 %v99_v36 }
  0x69   :  { %283 = vmatprep.mubr.bf16.mxu0 %v1680_v0 }
  0x70   :  { %284 = vmatmul.mubr.bf16.gmra.mrb[12].mxu0 %v100_v39 }
  0x71   :  { %293 = vmatprep.mubr.bf16.mxu0 %v1680_v0 }
  0x78   :  { %294 = vmatmul.mubr.bf16.gmra.mrb[16].mxu0 %v101_v42 }
  0x79   :  { %303 = vmatprep.mubr.bf16.mxu0 %v1680_v0 }
  0x80   :  { %304 = vmatmul.mubr.bf16.gmra.mrb[20].mxu0 %v102_v45 }
  0x81   :  { %313 = vmatprep.mubr.bf16.mxu0 %v1680_v0 }
  0x88   :  { %314 = vmatmul.mubr.bf16.gmra.mrb[24].mxu0 %v103_v48 }
  0x89   :  { %323 = vmatprep.mubr.bf16.mxu0 %v1680_v0 }
  0x90   :  { %324 = vmatmul.mubr.bf16.gmra.mrb[28].mxu0 %v104_v51 }
  0x91   :  { %333 = vmatprep.mubr.bf16.mxu0 %v1680_v0 }
  0x98   :  { %334 = vmatmul.mubr.bf16.gmra.mrb[32].mxu0 %v105_v54 }
  0x99   :  { %343 = vmatprep.mubr.bf16.mxu0 %v1680_v0 }
  0xa0   :  { %344 = vmatmul.mubr.bf16.gmra.mrb[36].mxu0 %v106_v57 }
  0xa1   :  { %353 = vmatprep.mubr.bf16.mxu0 %v1680_v0 }
  0xa8   :  { %354 = vmatmul.mubr.bf16.gmra.mrb[40].mxu0 %v107_v60 }
  0xa9   :  { %363 = vmatprep.mubr.bf16.mxu0 %v1680_v0 }
  0xb0   :  { %364 = vmatmul.mubr.bf16.gmra.mrb[44].mxu0 %v108_v1 }
  0xb1   :  { %373 = vmatprep.mubr.bf16.mxu0 %v1680_v0 }
  0xb8   :  { %374 = vmatmul.mubr.bf16.gmra.mrb[48].mxu0 %v109_v8 }
  0xb9   :  { %383 = vmatprep.mubr.bf16.mxu0 %v1680_v0 }
  0xc0   :  { %384 = vmatmul.mubr.bf16.gmra.mrb[52].mxu0 %v110_v11 }
  0xc1   :  { %393 = vmatprep.mubr.bf16.mxu0 %v1680_v0 }
  0xc8   :  { %394 = vmatmul.mubr.bf16.gmra.mrb[56].mxu0 %v111_v14 }
  0xc9   :  { %403 = vmatprep.mubr.bf16.mxu0 %v1680_v0 }
  0xd0   :  { %404 = vmatmul.mubr.bf16.gmra.mrb[60].mxu0 %v112_v17 }
 0x12b   :  { %v255_v0 = vpop.f32.mrb[0].mxu0 }
 0x12c   :  { %v256_v25 = vadd.f32 %v255_v0, %v1790_v23  ;;  %v257_v26 = vpop.f32.mrb[1].mxu0 }
 0x12d   :  { %v258_v27 = vadd.f32 %v257_v26, %v1792_v24  ;;  %v259_v28 = vpop.f32.mrb[2].mxu0 }
 0x12e   :  { %v260_v29 = vadd.f32 %v259_v28, %v1790_v23  ;;  %v261_v30 = vpop.f32.mrb[3].mxu0  ;;  %v414_v32 = vmax.f32 %v256_v25, 0.0 }
 0x12f   :  { %v262_v31 = vadd.f32 %v261_v30, %v1792_v24  ;;  %v415_v34 = vmax.f32 %v258_v27, 0.0 }
 0x130   :  { %v416_v33 = vmax.f32 %v260_v29, 0.0 }
 0x131   :  { %v417_v35 = vmax.f32 %v262_v31, 0.0 }
 0x132   :  { %v478_v36 = vpack.c.bf16 %v416_v33, %v414_v32 }
 0x133   :  { %v265_v37 = vpop.f32.mrb[4].mxu0  ;;  %v479_v38 = vpack.c.bf16 %v417_v35, %v415_v34 }
 0x134   :  { %v266_v39 = vadd.f32 %v265_v37, %v1790_v23  ;;  %v267_v40 = vpop.f32.mrb[5].mxu0 }
 0x135   :  { %v268_v41 = vadd.f32 %v267_v40, %v1792_v24  ;;  %v269_v42 = vpop.f32.mrb[6].mxu0  ;;  %677 = vmatprep.mubr.bf16.mxu1 %v479_v38 }
 0x136   :  { %v270_v43 = vadd.f32 %v269_v42, %v1790_v23  ;;  %v271_v44 = vpop.f32.mrb[7].mxu0  ;;  %678 = vmatmul.mubr.bf16.vlgmr.msra.gmra.mrb[0].mxu1 %v478_v36  ;;  %v418_v46 = vmax.f32 %v266_v39, 0.0 }
 0x137   :  { %v272_v45 = vadd.f32 %v271_v44, %v1792_v24  ;;  %v419_v48 = vmax.f32 %v268_v41, 0.0 }
 0x138   :  { %v420_v47 = vmax.f32 %v270_v43, 0.0 }
 0x139   :  { %v421_v49 = vmax.f32 %v272_v45, 0.0 }
 0x13a   :  { %v480_v50 = vpack.c.bf16 %v420_v47, %v418_v46 }
 0x13b   :  { %v481_v51 = vpack.c.bf16 %v421_v49, %v419_v48  ;;  %v275_v52 = vpop.f32.mrb[8].mxu0 }
 0x13c   :  { %v276_v53 = vadd.f32 %v275_v52, %v1790_v23  ;;  %v277_v54 = vpop.f32.mrb[9].mxu0 }
 0x13d   :  { %v278_v55 = vadd.f32 %v277_v54, %v1792_v24  ;;  %v279_v56 = vpop.f32.mrb[10].mxu0  ;;  %685 = vmatprep.mubr.bf16.mxu1 %v481_v51 }
 0x13e   :  { %v280_v57 = vadd.f32 %v279_v56, %v1790_v23  ;;  %v281_v58 = vpop.f32.mrb[11].mxu0  ;;  %686 = vmatmul.mubr.bf16.gmra.mrb[4].mxu1 %v480_v50  ;;  %v422_v60 = vmax.f32 %v276_v53, 0.0 }
 0x13f   :  { %v282_v59 = vadd.f32 %v281_v58, %v1792_v24  ;;  %v423_v62 = vmax.f32 %v278_v55, 0.0 }
 0x140   :  { %v424_v61 = vmax.f32 %v280_v57, 0.0 }
 0x141   :  { %v425_v63 = vmax.f32 %v282_v59, 0.0 }
 0x142   :  { %v482_v1 = vpack.c.bf16 %v424_v61, %v422_v60 }
 0x143   :  { %v483_v2 = vpack.c.bf16 %v425_v63, %v423_v62  ;;  %v285_v3 = vpop.f32.mrb[12].mxu0 }
 0x144   :  { %v286_v4 = vadd.f32 %v285_v3, %v1790_v23  ;;  %v287_v5 = vpop.f32.mrb[13].mxu0 }
 0x145   :  { %v288_v6 = vadd.f32 %v287_v5, %v1792_v24  ;;  %v289_v7 = vpop.f32.mrb[14].mxu0  ;;  %693 = vmatprep.mubr.bf16.mxu1 %v483_v2 }
 0x146   :  { %v290_v8 = vadd.f32 %v289_v7, %v1790_v23  ;;  %v291_v9 = vpop.f32.mrb[15].mxu0  ;;  %694 = vmatmul.mubr.bf16.gmra.mrb[8].mxu1 %v482_v1  ;;  %v426_v11 = vmax.f32 %v286_v4, 0.0 }
 0x147   :  { %v292_v10 = vadd.f32 %v291_v9, %v1792_v24  ;;  %v427_v13 = vmax.f32 %v288_v6, 0.0 }
 0x148   :  { %v428_v12 = vmax.f32 %v290_v8, 0.0 }
 0x149   :  { %v429_v14 = vmax.f32 %v292_v10, 0.0 }
 0x14a   :  { %v484_v15 = vpack.c.bf16 %v428_v12, %v426_v11 }
 0x14b   :  { %v485_v16 = vpack.c.bf16 %v429_v14, %v427_v13  ;;  %v295_v17 = vpop.f32.mrb[16].mxu0 }
 0x14c   :  { %v296_v20 = vadd.f32 %v295_v17, %v1790_v23  ;;  %v297_v21 = vpop.f32.mrb[17].mxu0 }
 0x14d   :  { %v298_v22 = vadd.f32 %v297_v21, %v1792_v24  ;;  %v299_v0 = vpop.f32.mrb[18].mxu0  ;;  %701 = vmatprep.mubr.bf16.mxu1 %v485_v16 }
 0x14e   :  { %v300_v25 = vadd.f32 %v299_v0, %v1790_v23  ;;  %v301_v26 = vpop.f32.mrb[19].mxu0  ;;  %702 = vmatmul.mubr.bf16.gmra.mrb[12].mxu1 %v484_v15  ;;  %v430_v28 = vmax.f32 %v296_v20, 0.0 }
 0x14f   :  { %v302_v27 = vadd.f32 %v301_v26, %v1792_v24  ;;  %v431_v30 = vmax.f32 %v298_v22, 0.0 }
 0x150   :  { %v432_v29 = vmax.f32 %v300_v25, 0.0 }
 0x151   :  { %v433_v31 = vmax.f32 %v302_v27, 0.0 }
 0x152   :  { %v486_v32 = vpack.c.bf16 %v432_v29, %v430_v28 }
 0x153   :  { %v487_v33 = vpack.c.bf16 %v433_v31, %v431_v30  ;;  %v305_v34 = vpop.f32.mrb[20].mxu0 }
 0x154   :  { %v306_v35 = vadd.f32 %v305_v34, %v1790_v23  ;;  %v307_v36 = vpop.f32.mrb[21].mxu0 }
 0x155   :  { %v308_v37 = vadd.f32 %v307_v36, %v1792_v24  ;;  %v309_v38 = vpop.f32.mrb[22].mxu0  ;;  %709 = vmatprep.mubr.bf16.mxu1 %v487_v33 }
 0x156   :  { %v310_v39 = vadd.f32 %v309_v38, %v1790_v23  ;;  %v311_v40 = vpop.f32.mrb[23].mxu0  ;;  %710 = vmatmul.mubr.bf16.gmra.mrb[16].mxu1 %v486_v32  ;;  %v434_v42 = vmax.f32 %v306_v35, 0.0 }
 0x157   :  { %v312_v41 = vadd.f32 %v311_v40, %v1792_v24  ;;  %v435_v44 = vmax.f32 %v308_v37, 0.0 }
 0x158   :  { %v436_v43 = vmax.f32 %v310_v39, 0.0 }
 0x159   :  { %v437_v45 = vmax.f32 %v312_v41, 0.0 }
 0x15a   :  { %v488_v46 = vpack.c.bf16 %v436_v43, %v434_v42 }
 0x15b   :  { %v489_v47 = vpack.c.bf16 %v437_v45, %v435_v44  ;;  %v315_v48 = vpop.f32.mrb[24].mxu0 }
 0x15c   :  { %v316_v49 = vadd.f32 %v315_v48, %v1790_v23  ;;  %v317_v50 = vpop.f32.mrb[25].mxu0 }
 0x15d   :  { %v318_v51 = vadd.f32 %v317_v50, %v1792_v24  ;;  %v319_v52 = vpop.f32.mrb[26].mxu0  ;;  %717 = vmatprep.mubr.bf16.mxu1 %v489_v47 }
 0x15e   :  { %v320_v53 = vadd.f32 %v319_v52, %v1790_v23  ;;  %v321_v54 = vpop.f32.mrb[27].mxu0  ;;  %718 = vmatmul.mubr.bf16.gmra.mrb[20].mxu1 %v488_v46  ;;  %v438_v56 = vmax.f32 %v316_v49, 0.0 }
 0x15f   :  { %v322_v55 = vadd.f32 %v321_v54, %v1792_v24  ;;  %v439_v58 = vmax.f32 %v318_v51, 0.0 }
 0x160   :  { %v440_v57 = vmax.f32 %v320_v53, 0.0 }
 0x161   :  { %v441_v59 = vmax.f32 %v322_v55, 0.0 }
 0x162   :  { %v490_v60 = vpack.c.bf16 %v440_v57, %v438_v56 }
 0x163   :  { %v491_v61 = vpack.c.bf16 %v441_v59, %v439_v58  ;;  %v325_v62 = vpop.f32.mrb[28].mxu0 }
 0x164   :  { %v326_v63 = vadd.f32 %v325_v62, %v1790_v23  ;;  %v327_v1 = vpop.f32.mrb[29].mxu0 }
 0x165   :  { %v328_v2 = vadd.f32 %v327_v1, %v1792_v24  ;;  %v329_v3 = vpop.f32.mrb[30].mxu0  ;;  %725 = vmatprep.mubr.bf16.mxu1 %v491_v61 }
 0x166   :  { %v330_v4 = vadd.f32 %v329_v3, %v1790_v23  ;;  %v331_v5 = vpop.f32.mrb[31].mxu0  ;;  %726 = vmatmul.mubr.bf16.gmra.mrb[24].mxu1 %v490_v60  ;;  %v442_v7 = vmax.f32 %v326_v63, 0.0 }
 0x167   :  { %v332_v6 = vadd.f32 %v331_v5, %v1792_v24  ;;  %v443_v9 = vmax.f32 %v328_v2, 0.0 }
 0x168   :  { %v444_v8 = vmax.f32 %v330_v4, 0.0 }
 0x169   :  { %v445_v10 = vmax.f32 %v332_v6, 0.0 }
 0x16a   :  { %v492_v11 = vpack.c.bf16 %v444_v8, %v442_v7 }
 0x16b   :  { %v493_v12 = vpack.c.bf16 %v445_v10, %v443_v9  ;;  %v335_v13 = vpop.f32.mrb[32].mxu0 }
 0x16c   :  { %v336_v14 = vadd.f32 %v335_v13, %v1790_v23  ;;  %v337_v15 = vpop.f32.mrb[33].mxu0 }
 0x16d   :  { %v338_v16 = vadd.f32 %v337_v15, %v1792_v24  ;;  %v339_v17 = vpop.f32.mrb[34].mxu0  ;;  %733 = vmatprep.mubr.bf16.mxu1 %v493_v12 }
 0x16e   :  { %v340_v20 = vadd.f32 %v339_v17, %v1790_v23  ;;  %v341_v21 = vpop.f32.mrb[35].mxu0  ;;  %734 = vmatmul.mubr.bf16.gmra.mrb[28].mxu1 %v492_v11  ;;  %v446_v0 = vmax.f32 %v336_v14, 0.0 }
 0x16f   :  { %v342_v22 = vadd.f32 %v341_v21, %v1792_v24  ;;  %v447_v26 = vmax.f32 %v338_v16, 0.0 }
 0x170   :  { %v448_v25 = vmax.f32 %v340_v20, 0.0 }
 0x171   :  { %v449_v27 = vmax.f32 %v342_v22, 0.0 }
 0x172   :  { %v494_v28 = vpack.c.bf16 %v448_v25, %v446_v0 }
 0x173   :  { %v495_v29 = vpack.c.bf16 %v449_v27, %v447_v26  ;;  %v345_v30 = vpop.f32.mrb[36].mxu0 }
 0x174   :  { %v346_v31 = vadd.f32 %v345_v30, %v1790_v23  ;;  %v347_v32 = vpop.f32.mrb[37].mxu0 }
 0x175   :  { %v348_v33 = vadd.f32 %v347_v32, %v1792_v24  ;;  %v349_v34 = vpop.f32.mrb[38].mxu0  ;;  %741 = vmatprep.mubr.bf16.mxu1 %v495_v29 }
 0x176   :  { %v350_v35 = vadd.f32 %v349_v34, %v1790_v23  ;;  %v351_v36 = vpop.f32.mrb[39].mxu0  ;;  %742 = vmatmul.mubr.bf16.gmra.mrb[32].mxu1 %v494_v28  ;;  %v450_v38 = vmax.f32 %v346_v31, 0.0 }
 0x177   :  { %v352_v37 = vadd.f32 %v351_v36, %v1792_v24  ;;  %v451_v40 = vmax.f32 %v348_v33, 0.0 }
 0x178   :  { %v452_v39 = vmax.f32 %v350_v35, 0.0 }
 0x179   :  { %v453_v41 = vmax.f32 %v352_v37, 0.0 }
 0x17a   :  { %v496_v42 = vpack.c.bf16 %v452_v39, %v450_v38 }
 0x17b   :  { %v497_v43 = vpack.c.bf16 %v453_v41, %v451_v40  ;;  %v355_v44 = vpop.f32.mrb[40].mxu0 }
 0x17c   :  { %v356_v45 = vadd.f32 %v355_v44, %v1790_v23  ;;  %v357_v46 = vpop.f32.mrb[41].mxu0 }
 0x17d   :  { %v358_v47 = vadd.f32 %v357_v46, %v1792_v24  ;;  %v359_v48 = vpop.f32.mrb[42].mxu0  ;;  %749 = vmatprep.mubr.bf16.mxu1 %v497_v43 }
 0x17e   :  { %v360_v49 = vadd.f32 %v359_v48, %v1790_v23  ;;  %v361_v50 = vpop.f32.mrb[43].mxu0  ;;  %750 = vmatmul.mubr.bf16.gmra.mrb[36].mxu1 %v496_v42  ;;  %v454_v52 = vmax.f32 %v356_v45, 0.0 }
 0x17f   :  { %v362_v51 = vadd.f32 %v361_v50, %v1792_v24  ;;  %v455_v54 = vmax.f32 %v358_v47, 0.0 }
 0x180   :  { %v456_v53 = vmax.f32 %v360_v49, 0.0 }
 0x181   :  { %v457_v55 = vmax.f32 %v362_v51, 0.0 }
 0x182   :  { %v498_v56 = vpack.c.bf16 %v456_v53, %v454_v52 }
 0x183   :  { %v499_v57 = vpack.c.bf16 %v457_v55, %v455_v54  ;;  %v365_v58 = vpop.f32.mrb[44].mxu0 }
 0x184   :  { %v366_v59 = vadd.f32 %v365_v58, %v1790_v23  ;;  %v367_v60 = vpop.f32.mrb[45].mxu0 }
 0x185   :  { %v368_v61 = vadd.f32 %v367_v60, %v1792_v24  ;;  %v369_v62 = vpop.f32.mrb[46].mxu0  ;;  %757 = vmatprep.mubr.bf16.mxu1 %v499_v57 }
 0x186   :  { %v370_v63 = vadd.f32 %v369_v62, %v1790_v23  ;;  %v371_v1 = vpop.f32.mrb[47].mxu0  ;;  %758 = vmatmul.mubr.bf16.gmra.mrb[40].mxu1 %v498_v56  ;;  %v458_v3 = vmax.f32 %v366_v59, 0.0 }
 0x187   :  { %v372_v2 = vadd.f32 %v371_v1, %v1792_v24  ;;  %v459_v5 = vmax.f32 %v368_v61, 0.0 }
 0x188   :  { %v460_v4 = vmax.f32 %v370_v63, 0.0 }
 0x189   :  { %v461_v6 = vmax.f32 %v372_v2, 0.0 }
 0x18a   :  { %v500_v7 = vpack.c.bf16 %v460_v4, %v458_v3 }
 0x18b   :  { %v501_v8 = vpack.c.bf16 %v461_v6, %v459_v5  ;;  %v375_v9 = vpop.f32.mrb[48].mxu0  ;;  %v875_v5 = vmul.u32 128, %v1783_v19  ;;  %v809_v6 = vadd.s32 16, %v1783_v19 }
 0x18c   :  { %v376_v10 = vadd.f32 %v375_v9, %v1790_v23  ;;  %v377_v11 = vpop.f32.mrb[49].mxu0 }
 0x18d   :  { %v378_v12 = vadd.f32 %v377_v11, %v1792_v24  ;;  %v379_v13 = vpop.f32.mrb[50].mxu0  ;;  %765 = vmatprep.mubr.bf16.mxu1 %v501_v8  ;;  %v810_v8 = vadd.s32 24, %v1783_v19  ;;  %v877_v11 = vmul.u32 128, %v809_v6 }
 0x18e   :  { %v380_v14 = vadd.f32 %v379_v13, %v1790_v23  ;;  %v381_v15 = vpop.f32.mrb[51].mxu0  ;;  %766 = vmatmul.mubr.bf16.gmra.mrb[44].mxu1 %v500_v7  ;;  %v462_v17 = vmax.f32 %v376_v10, 0.0  ;;  %v1869_v10 = vstv %s948_s22 }
 0x18f   :  { %v382_v16 = vadd.f32 %v381_v15, %v1792_v24  ;;  %v463_v21 = vmax.f32 %v378_v12, 0.0  ;;  %v878_v13 = vmul.u32 128, %v810_v8 }
 0x190   :  { %v464_v20 = vmax.f32 %v380_v14, 0.0  ;;  %v811_v14 = vadd.s32 32, %v1783_v19 }
 0x191   :  { %v465_v22 = vmax.f32 %v382_v16, 0.0 }
 0x192   :  { %v502_v0 = vpack.c.bf16 %v464_v20, %v462_v17  ;;  %v879_v20 = vmul.u32 128, %v811_v14 }
 0x193   :  { %v503_v25 = vpack.c.bf16 %v465_v22, %v463_v21  ;;  %v385_v26 = vpop.f32.mrb[52].mxu0 }
 0x194   :  { %v386_v27 = vadd.f32 %v385_v26, %v1790_v23  ;;  %v387_v28 = vpop.f32.mrb[53].mxu0 }
 0x195   :  { %v388_v29 = vadd.f32 %v387_v28, %v1792_v24  ;;  %v389_v30 = vpop.f32.mrb[54].mxu0  ;;  %773 = vmatprep.mubr.bf16.mxu1 %v503_v25 }
 0x196   :  { %v390_v31 = vadd.f32 %v389_v30, %v1790_v23  ;;  %v391_v32 = vpop.f32.mrb[55].mxu0  ;;  %774 = vmatmul.mubr.bf16.gmra.mrb[48].mxu1 %v502_v0  ;;  %v466_v34 = vmax.f32 %v386_v27, 0.0  ;;  %v812_v27 = vadd.s32 40, %v1783_v19 }
 0x197   :  { %v392_v33 = vadd.f32 %v391_v32, %v1792_v24  ;;  %v467_v36 = vmax.f32 %v388_v29, 0.0  ;;  %v813_v29 = vadd.s32 48, %v1783_v19 }
 0x198   :  { %v468_v35 = vmax.f32 %v390_v31, 0.0  ;;  %v814_v31 = vadd.s32 56, %v1783_v19 }
 0x199   :  { %v469_v37 = vmax.f32 %v392_v33, 0.0 }
 0x19a   :  { %v504_v38 = vpack.c.bf16 %v468_v35, %v466_v34  ;;  %v880_v35 = vmul.u32 128, %v812_v27 }
 0x19b   :  { %v505_v39 = vpack.c.bf16 %v469_v37, %v467_v36  ;;  %v395_v40 = vpop.f32.mrb[56].mxu0  ;;  %v881_v37 = vmul.u32 128, %v813_v29 }
 0x19c   :  { %v396_v41 = vadd.f32 %v395_v40, %v1790_v23  ;;  %v397_v42 = vpop.f32.mrb[57].mxu0 }
 0x19d   :  { %v398_v43 = vadd.f32 %v397_v42, %v1792_v24  ;;  %v399_v44 = vpop.f32.mrb[58].mxu0  ;;  %781 = vmatprep.mubr.bf16.mxu1 %v505_v39  ;;  %v882_v39 = vmul.u32 128, %v814_v31 }
 0x19e   :  { %v400_v45 = vadd.f32 %v399_v44, %v1790_v23  ;;  %v401_v46 = vpop.f32.mrb[59].mxu0  ;;  %782 = vmatmul.mubr.bf16.gmra.mrb[52].mxu1 %v504_v38  ;;  %v470_v48 = vmax.f32 %v396_v41, 0.0 }
 0x19f   :  { %v402_v47 = vadd.f32 %v401_v46, %v1792_v24  ;;  %v471_v50 = vmax.f32 %v398_v43, 0.0 }
 0x1a0   :  { %v472_v49 = vmax.f32 %v400_v45, 0.0 }
 0x1a1   :  { %v473_v51 = vmax.f32 %v402_v47, 0.0 }
 0x1a2   :  { %v506_v52 = vpack.c.bf16 %v472_v49, %v470_v48 }
 0x1a3   :  { %v507_v53 = vpack.c.bf16 %v473_v51, %v471_v50  ;;  %v405_v54 = vpop.f32.mrb[60].mxu0 }
 0x1a4   :  { %v406_v55 = vadd.f32 %v405_v54, %v1790_v23  ;;  %v407_v56 = vpop.f32.mrb[61].mxu0 }
 0x1a5   :  { %v408_v57 = vadd.f32 %v407_v56, %v1792_v24  ;;  %v409_v58 = vpop.f32.mrb[62].mxu0  ;;  %789 = vmatprep.mubr.bf16.mxu1 %v507_v53  ;;  %v815_v56 = vadd.s32 64, %v1783_v19 }
 0x1a6   :  { %v410_v59 = vadd.f32 %v409_v58, %v1790_v23  ;;  %v411_v60 = vpop.f32.mrb[63].mxu0  ;;  %790 = vmatmul.mubr.bf16.gmra.mrb[56].mxu1 %v506_v52  ;;  %v474_v62 = vmax.f32 %v406_v55, 0.0  ;;  %v808_v23 = vadd.s32 8, %v1783_v19  ;;  %v816_v58 = vadd.s32 72, %v1783_v19 }
 0x1a7   :  { %v412_v61 = vadd.f32 %v411_v60, %v1792_v24  ;;  %v475_v1 = vmax.f32 %v408_v57, 0.0  ;;  %v1863_v24 = vand.u32 127, %v131_v18 }
 0x1a8   :  { %v476_v63 = vmax.f32 %v410_v59, 0.0  ;;  %v876_v7 = vmul.u32 128, %v808_v23 }
 0x1a9   :  { %v477_v2 = vmax.f32 %v412_v61, 0.0  ;;  %v907_v9 = vadd.s32 %v875_v5, %v1863_v24  ;;  %v909_v15 = vadd.s32 %v877_v11, %v1863_v24  ;;  %v910_v17 = vadd.s32 %v878_v13, %v1863_v24 }
 0x1aa   :  { %v508_v3 = vpack.c.bf16 %v476_v63, %v474_v62  ;;  %v908_v12 = vadd.s32 %v876_v7, %v1863_v24  ;;  %v911_v26 = vadd.s32 %v879_v20, %v1863_v24  ;;  %v912_v43 = vadd.s32 %v880_v35, %v1863_v24 }
 0x1ab   :  { %v509_v4 = vpack.c.bf16 %v477_v2, %v475_v1  ;;  %v950_v18 = vxor.u32 %v1869_v10, %v907_v9  ;;  %v952_v22 = vxor.u32 %v1869_v10, %v909_v15  ;;  %v953_v25 = vxor.u32 %v1869_v10, %v910_v17 }
 0x1ac   :  { %v951_v16 = vxor.u32 %v1869_v10, %v908_v12  ;;  %v954_v34 = vxor.u32 %v1869_v10, %v911_v26  ;;  %v913_v45 = vadd.s32 %v881_v37, %v1863_v24  ;;  %v914_v47 = vadd.s32 %v882_v39, %v1863_v24 }
 0x1ad   :  { %797 = vmatprep.mubr.bf16.mxu1 %v509_v4  ;;  %v982_v21 = vshrl.u32 %v950_v18, 16  ;;  %v984_v30 = vshrl.u32 %v952_v22, 16  ;;  %v985_v33 = vshrl.u32 %v953_v25, 16  ;;  %v955_v51 = vxor.u32 %v1869_v10, %v912_v43 }
 0x1ae   :  { %798 = vmatmul.mubr.bf16.gmra.mrb[60].mxu1 %v508_v3  ;;  %v983_v0 = vshrl.u32 %v951_v16, 16  ;;  %v986_v42 = vshrl.u32 %v954_v34, 16  ;;  %v956_v53 = vxor.u32 %v1869_v10, %v913_v45  ;;  %v957_v55 = vxor.u32 %v1869_v10, %v914_v47 }
 0x1af   :  { %v1014_v28 = vxor.u32 %v982_v21, %v950_v18  ;;  %v1016_v38 = vxor.u32 %v984_v30, %v952_v22  ;;  %v1017_v41 = vxor.u32 %v985_v33, %v953_v25  ;;  %v987_v61 = vshrl.u32 %v955_v51, 16 }
 0x1b0   :  { %v1015_v32 = vxor.u32 %v983_v0, %v951_v16  ;;  %v1018_v50 = vxor.u32 %v986_v42, %v954_v34  ;;  %v817_v62 = vadd.s32 80, %v1783_v19  ;;  %v988_v1 = vshrl.u32 %v956_v53, 16 }
 0x1b1   :  { %v1046_v36 = vmul.u32 2146121005, %v1014_v28  ;;  %v1048_v46 = vmul.u32 2146121005, %v1016_v38  ;;  %v989_v3 = vshrl.u32 %v957_v55, 16  ;;  %v1019_v8 = vxor.u32 %v987_v61, %v955_v51 }
 0x1b2   :  { %v1047_v40 = vmul.u32 2146121005, %v1015_v32  ;;  %v1049_v49 = vmul.u32 2146121005, %v1017_v41  ;;  %v1020_v12 = vxor.u32 %v988_v1, %v956_v53  ;;  %v818_v17 = vadd.s32 88, %v1783_v19 }
 0x1b3   :  { %v1078_v44 = vshrl.u32 %v1046_v36, 15  ;;  %v1080_v54 = vshrl.u32 %v1048_v46, 15  ;;  %v1050_v60 = vmul.u32 2146121005, %v1018_v50  ;;  %v883_v4 = vmul.u32 128, %v815_v56 }
 0x1b4   :  { %v1079_v48 = vshrl.u32 %v1047_v40, 15  ;;  %v1081_v59 = vshrl.u32 %v1049_v49, 15  ;;  %v884_v5 = vmul.u32 128, %v816_v58  ;;  %v885_v9 = vmul.u32 128, %v817_v62 }
 0x1b5   :  { %v1110_v52 = vxor.u32 %v1078_v44, %v1046_v36  ;;  %v1112_v2 = vxor.u32 %v1080_v54, %v1048_v46  ;;  %v1082_v7 = vshrl.u32 %v1050_v60, 15  ;;  %v1021_v14 = vxor.u32 %v989_v3, %v957_v55 }
 0x1b6   :  { %v1111_v57 = vxor.u32 %v1079_v48, %v1047_v40  ;;  %v1113_v6 = vxor.u32 %v1081_v59, %v1049_v49  ;;  %v915_v18 = vadd.s32 %v883_v4, %v1863_v24  ;;  %v916_v16 = vadd.s32 %v884_v5, %v1863_v24  ;;  %v1904_v40 = vld [vmem:[%s2069_s5] ss:$0 sm:$0xff] }
 0x1b7   :  { %v1142_v63 = vmul.u32 2221713035, %v1110_v52  ;;  %v1144_v13 = vmul.u32 2221713035, %v1112_v2  ;;  %v1114_v21 = vxor.u32 %v1082_v7, %v1050_v60  ;;  %v917_v0 = vadd.s32 %v885_v9, %v1863_v24 }
 0x1b8   :  { %v1143_v23 = vmul.u32 2221713035, %v1111_v57  ;;  %v1145_v20 = vmul.u32 2221713035, %v1113_v6  ;;  %v958_v29 = vxor.u32 %v1869_v10, %v915_v18  ;;  %v959_v31 = vxor.u32 %v1869_v10, %v916_v16 }
 0x1b9   :  { %v1174_v11 = vshrl.u32 %v1142_v63, 16  ;;  %v1051_v22 = vmul.u32 2146121005, %v1019_v8  ;;  %v1052_v26 = vmul.u32 2146121005, %v1020_v12  ;;  %v1176_v27 = vshrl.u32 %v1144_v13, 16 }
 0x1ba   :  { %v1175_v15 = vshrl.u32 %v1143_v23, 16  ;;  %v1053_v28 = vmul.u32 2146121005, %v1021_v14  ;;  %v886_v32 = vmul.u32 128, %v818_v17  ;;  %v1177_v33 = vshrl.u32 %v1145_v20, 16 }
 0x1bb   :  { %v1206_v25 = vxor.u32 %v1174_v11, %v1142_v63  ;;  %v1146_v34 = vmul.u32 2221713035, %v1114_v21  ;;  %v1083_v35 = vshrl.u32 %v1051_v22, 15  ;;  %v960_v36 = vxor.u32 %v1869_v10, %v917_v0 }
 0x1bc   :  { %v1207_v30 = vxor.u32 %v1175_v15, %v1143_v23  ;;  %v1084_v38 = vshrl.u32 %v1052_v26, 15  ;;  %v819_v39 = vadd.s32 96, %v1783_v19  ;;  %v1906_v42 = vxor.u32 %v1176_v27, %v1144_v13 }
 0x1bd   :  { %vm1238_vm0 = vcmp.ge.u32.totalorder %v1206_v25, 429496729  ;;  %v1085_v43 = vshrl.u32 %v1053_v28, 15  ;;  %v990_v44 = vshrl.u32 %v958_v29, 16  ;;  %v820_v45 = vadd.s32 104, %v1783_v19 }
 0x1be   :  { %vm1239_vm1 = vcmp.ge.u32.totalorder %v1207_v30, 429496729  ;;  %v991_v48 = vshrl.u32 %v959_v31, 16  ;;  %v918_v49 = vadd.s32 %v886_v32, %v1863_v24  ;;  %v1910_v51 = vxor.u32 %v1177_v33, %v1145_v20 }
 0x1bf   :  { %v1178_v52 = vshrl.u32 %v1146_v34, 16  ;;  %v1115_v53 = vxor.u32 %v1083_v35, %v1051_v22  ;;  %v992_v54 = vshrl.u32 %v960_v36, 16  ;;  %v1116_v57 = vxor.u32 %v1084_v38, %v1052_v26 }
 0x1c0   :  { %v887_v58 = vmul.u32 128, %v819_v39  ;;  %vm1240_vm2 = vcmp.ge.u32.totalorder %v1906_v42, 429496729  ;;  %v1914_v59 = vxor.u32 %v1085_v43, %v1053_v28  ;;  %v1022_v60 = vxor.u32 %v990_v44, %v958_v29 }
 0x1c1   :  { %v888_v61 = vmul.u32 128, %v820_v45  ;;  %v1023_v1 = vxor.u32 %v991_v48, %v959_v31  ;;  %v961_v2 = vxor.u32 %v1869_v10, %v918_v49  ;;  %vm1241_vm3 = vcmp.ge.u32.totalorder %v1910_v51, 429496729 }
 0x1c2   :  { %v1919_v3 = vxor.u32 %v1178_v52, %v1146_v34  ;;  %v1147_v4 = vmul.u32 2221713035, %v1115_v53  ;;  %v1024_v23 = vxor.u32 %v992_v54, %v960_v36  ;;  %v821_v5 = vadd.s32 112, %v1783_v19 }
 0x1c3   :  { %v1148_v9 = vmul.u32 2221713035, %v1116_v57  ;;  %v919_v11 = vadd.s32 %v887_v58, %v1863_v24  ;;  %v1149_v13 = vmul.u32 2221713035, %v1914_v59  ;;  %v920_v18 = vadd.s32 %v888_v61, %v1863_v24 }
 0x1c4   :  { %v1054_v14 = vmul.u32 2146121005, %v1022_v60  ;;  %v822_v15 = vadd.s32 120, %v1783_v19  ;;  %v1055_v21 = vmul.u32 2146121005, %v1023_v1  ;;  %v993_v22 = vshrl.u32 %v961_v2, 16 }
 0x1c5   :  { %v1179_v25 = vshrl.u32 %v1147_v4, 16  ;;  %v1056_v26 = vmul.u32 2146121005, %v1024_v23  ;;  %v889_v27 = vmul.u32 128, %v821_v5  ;;  %v1180_v31 = vshrl.u32 %v1148_v9, 16 }
 0x1c6   :  { %v962_v32 = vxor.u32 %v1869_v10, %v919_v11  ;;  %vm1242_vm4 = vcmp.ge.u32.totalorder %v1919_v3, 429496729  ;;  %v1086_v33 = vshrl.u32 %v1054_v14, 15  ;;  %v963_v30 = vxor.u32 %v1869_v10, %v920_v18 }
 0x1c7   :  { %v890_v34 = vmul.u32 128, %v822_v15  ;;  %v1025_v38 = vxor.u32 %v993_v22, %v961_v2  ;;  %v1211_v39 = vxor.u32 %v1179_v25, %v1147_v4  ;;  %v1088_v43 = vshrl.u32 %v1056_v26, 15 }
 0x1c8   :  { %v921_v44 = vadd.s32 %v889_v27, %v1863_v24  ;;  %v1936_v48 = vxor.u32 %v1180_v31, %v1148_v9  ;;  %v994_v49 = vshrl.u32 %v962_v32, 16  ;;  %v1938_v52 = vxor.u32 %v1086_v33, %v1054_v14 }
 0x1c9   :  { %v995_v53 = vshrl.u32 %v963_v30, 16  ;;  %v922_v54 = vadd.s32 %v890_v34, %v1863_v24  ;;  %v1057_v59 = vmul.u32 2146121005, %v1025_v38  ;;  %v824_v1 = vadd.s32 136, %v1783_v19 }
 0x1ca   :  { %vm1243_vm5 = vcmp.ge.u32.totalorder %v1211_v39, 429496729  ;;  %v1026_v23 = vxor.u32 %v994_v49, %v962_v32  ;;  %vm1244_vm6 = vcmp.ge.u32.totalorder %v1936_v48, 429496729  ;;  %v1150_v51 = vmul.u32 2221713035, %v1938_v52 }
 0x1cb   :  { %v1027_v5 = vxor.u32 %v995_v53, %v963_v30  ;;  %v892_v18 = vmul.u32 128, %v824_v1  ;;  %v825_v15 = vadd.s32 144, %v1783_v19  ;;  %v826_v27 = vadd.s32 152, %v1783_v19 }
 0x1cc   :  { %v1182_v32 = vshrl.u32 %v1150_v51, 16 }
 0x209   :  { %v1433_v37 = vpop.f32.mrb[0].mxu1 }
 0x20a   :  { %v1434_v41 = vpop.f32.mrb[1].mxu1 }
 0x20b   :  { %v1435_v46 = vadd.f32 %v1434_v41, %v1433_v37  ;;  %v1436_v47 = vpop.f32.mrb[2].mxu1  ;;  %v1087_v37 = vshrl.u32 %v1055_v21, 15  ;;  %v1181_v41 = vshrl.u32 %v1149_v13, 16 }
 0x20c   :  { %v1437_v50 = vpop.f32.mrb[3].mxu1 }
 0x20d   :  { %v680_v55 = vadd.f32 %v1435_v46, %v1904_v40  ;;  %v1438_v56 = vadd.f32 %v1437_v50, %v1436_v47  ;;  %v1119_v58 = vxor.u32 %v1087_v37, %v1055_v21  ;;  %v1944_v61 = vxor.u32 %v1181_v41, %v1149_v13 }
 0x20e   :  { %v1058_v21 = vmul.u32 2146121005, %v1026_v23 }
 0x20f   :  { %v1270_v62 = vmul.f32 1.1111112, %v680_v55  ;;  %v683_v63 = vadd.f32 %v1438_v56, %v1904_v40  ;;  %v823_v55 = vadd.s32 128, %v1783_v19  ;;  %v1151_v11 = vmul.u32 2221713035, %v1119_v58 }
 0x210   :  { %vm1245_vm7 = vcmp.ge.u32.totalorder %v1944_v61, 429496729 }
 0x211   :  { %v1302_v6 = vsel %vm1238_vm0, %v1270_v62, 0.0  ;;  %v1271_v7 = vmul.f32 1.1111112, %v683_v63  ;;  %v1439_v8 = vpop.f32.mrb[4].mxu1  ;;  %v1120_v62 = vxor.u32 %v1088_v43, %v1056_v26  ;;  %v964_v63 = vxor.u32 %v1869_v10, %v921_v44 }
 0x212   :  { %1334 = vst [vmem:[#allocation10] sm:$0xff] %v1302_v6  ;;  %v1440_v12 = vpop.f32.mrb[5].mxu1  ;;  %v965_v6 = vxor.u32 %v1869_v10, %v922_v54  ;;  %v1183_v30 = vshrl.u32 %v1151_v11, 16  ;;  %v1090_v43 = vshrl.u32 %v1058_v21, 15 }
 0x213   :  { %v1303_v16 = vsel %vm1239_vm1, %v1271_v7, 0.0  ;;  %v1441_v17 = vadd.f32 %v1440_v12, %v1439_v8  ;;  %v1442_v20 = vpop.f32.mrb[6].mxu1  ;;  %v891_v7 = vmul.u32 128, %v823_v55  ;;  %v1089_v12 = vshrl.u32 %v1057_v59, 15 }
 0x214   :  { %1335 = vst [vmem:[#allocation10 + $0x8] sm:$0xff] %v1303_v16  ;;  %v1443_v0 = vpop.f32.mrb[7].mxu1  ;;  %v1152_v13 = vmul.u32 2221713035, %v1120_v62  ;;  %v996_v14 = vshrl.u32 %v964_v63, 16  ;;  %v997_v25 = vshrl.u32 %v965_v6, 16  ;;  %v1215_v53 = vxor.u32 %v1183_v30, %v1151_v11 }
 0x215   :  { %v688_v28 = vadd.f32 %v1441_v17, %v1904_v40  ;;  %v1444_v29 = vadd.f32 %v1443_v0, %v1442_v20  ;;  %v1059_v0 = vmul.u32 2146121005, %v1027_v5  ;;  %v923_v26 = vadd.s32 %v891_v7, %v1863_v24 }
 0x216   :  { %v1121_v33 = vxor.u32 %v1089_v12, %v1057_v59  ;;  %v1028_v34 = vxor.u32 %v996_v14, %v964_v63  ;;  %v1184_v41 = vshrl.u32 %v1152_v13, 16  ;;  %v827_v11 = vadd.s32 160, %v1783_v19 }
 0x217   :  { %v1272_v35 = vmul.f32 1.1111112, %v688_v28  ;;  %v691_v36 = vadd.f32 %v1444_v29, %v1904_v40  ;;  %v1091_v44 = vshrl.u32 %v1059_v0, 15  ;;  %v966_v39 = vxor.u32 %v1869_v10, %v923_v26 }
 0x218   :  { %v1153_v52 = vmul.u32 2221713035, %v1121_v33  ;;  %v1060_v54 = vmul.u32 2146121005, %v1028_v34  ;;  %v1968_v59 = vxor.u32 %v1184_v41, %v1152_v13  ;;  %vm1247_vm9 = vcmp.ge.u32.totalorder %v1215_v53, 429496729 }
 0x219   :  { %v1304_v45 = vsel %vm1240_vm2, %v1272_v35, 0.0  ;;  %v1273_v46 = vmul.f32 1.1111112, %v691_v36  ;;  %v1445_v47 = vpop.f32.mrb[8].mxu1  ;;  %v924_v35 = vadd.s32 %v892_v18, %v1863_v24  ;;  %v893_v36 = vmul.u32 128, %v825_v15 }
 0x21a   :  { %1336 = vst [vmem:[#allocation10 + $0x10] sm:$0xff] %v1304_v45  ;;  %v1446_v50 = vpop.f32.mrb[9].mxu1  ;;  %v1029_v45 = vxor.u32 %v997_v25, %v965_v6  ;;  %v1123_v63 = vxor.u32 %v1091_v44, %v1059_v0  ;;  %v1185_v48 = vshrl.u32 %v1153_v52, 16  ;;  %v1092_v7 = vshrl.u32 %v1060_v54, 15 }
 0x21b   :  { %v1305_v56 = vsel %vm1241_vm3, %v1273_v46, 0.0  ;;  %v1447_v57 = vadd.f32 %v1446_v50, %v1445_v47  ;;  %v1448_v42 = vpop.f32.mrb[10].mxu1  ;;  %v894_v46 = vmul.u32 128, %v826_v27  ;;  %v1214_v50 = vxor.u32 %v1182_v32, %v1150_v51 }
 0x21c   :  { %1337 = vst [vmem:[#allocation10 + $0x18] sm:$0xff] %v1305_v56  ;;  %v1449_v60 = vpop.f32.mrb[11].mxu1  ;;  %v967_v55 = vxor.u32 %v1869_v10, %v924_v35  ;;  %v925_v56 = vadd.s32 %v893_v36, %v1863_v24  ;;  %v1061_v1 = vmul.u32 2146121005, %v1029_v45  ;;  %vm1248_vm10 = vcmp.ge.u32.totalorder %v1968_v59, 429496729 }
 0x21d   :  { %v696_v2 = vadd.f32 %v1447_v57, %v1904_v40  ;;  %v1450_v4 = vadd.f32 %v1449_v60, %v1448_v42  ;;  %v1122_v60 = vxor.u32 %v1090_v43, %v1058_v21  ;;  %vm1246_vm8 = vcmp.ge.u32.totalorder %v1214_v50, 429496729 }
 0x21e   :  { %v1155_v61 = vmul.u32 2221713035, %v1123_v63  ;;  %v1093_v18 = vshrl.u32 %v1061_v1, 15  ;;  %v1217_v21 = vxor.u32 %v1185_v48, %v1153_v52  ;;  %v1124_v0 = vxor.u32 %v1092_v7, %v1060_v54 }
 0x21f   :  { %v1274_v8 = vmul.f32 1.1111112, %v696_v2  ;;  %v699_v9 = vadd.f32 %v1450_v4, %v1904_v40  ;;  %v998_v2 = vshrl.u32 %v966_v39, 16  ;;  %v926_v4 = vadd.s32 %v894_v46, %v1863_v24 }
 0x220   :  { %v1154_v14 = vmul.u32 2221713035, %v1122_v60  ;;  %v895_v27 = vmul.u32 128, %v827_v11  ;;  %v1125_v30 = vxor.u32 %v1093_v18, %v1061_v1  ;;  %vm1249_vm11 = vcmp.ge.u32.totalorder %v1217_v21, 429496729 }
 0x221   :  { %v1306_v16 = vsel %vm1242_vm4, %v1274_v8, 0.0  ;;  %v1275_v17 = vmul.f32 1.1111112, %v699_v9  ;;  %v1451_v20 = vpop.f32.mrb[12].mxu1  ;;  %v999_v8 = vshrl.u32 %v967_v55, 16  ;;  %v968_v9 = vxor.u32 %v1869_v10, %v925_v56 }
 0x222   :  { %1338 = vst [vmem:[#allocation10 + $0x20] sm:$0xff] %v1306_v16  ;;  %v1452_v22 = vpop.f32.mrb[13].mxu1  ;;  %v1030_v15 = vxor.u32 %v998_v2, %v966_v39  ;;  %v969_v16 = vxor.u32 %v1869_v10, %v926_v4  ;;  %v1186_v32 = vshrl.u32 %v1154_v14, 16  ;;  %v1156_v44 = vmul.u32 2221713035, %v1124_v0 }
 0x223   :  { %v1307_v28 = vsel %vm1243_vm5, %v1275_v17, 0.0  ;;  %v1453_v29 = vadd.f32 %v1452_v22, %v1451_v20  ;;  %v1454_v31 = vpop.f32.mrb[14].mxu1  ;;  %v828_v22 = vadd.s32 168, %v1783_v19  ;;  %v1031_v25 = vxor.u32 %v999_v8, %v967_v55 }
 0x224   :  { %1339 = vst [vmem:[#allocation10 + $0x28] sm:$0xff] %v1307_v28  ;;  %v1455_v3 = vpop.f32.mrb[15].mxu1  ;;  %v1000_v26 = vshrl.u32 %v968_v9, 16  ;;  %v1062_v34 = vmul.u32 2146121005, %v1030_v15  ;;  %v1001_v35 = vshrl.u32 %v969_v16, 16  ;;  %v927_v46 = vadd.s32 %v895_v27, %v1863_v24 }
 0x225   :  { %v704_v37 = vadd.f32 %v1453_v29, %v1904_v40  ;;  %v1456_v38 = vadd.f32 %v1455_v3, %v1454_v31  ;;  %v1187_v3 = vshrl.u32 %v1155_v61, 16  ;;  %v896_v41 = vmul.u32 128, %v828_v22 }
 0x226   :  { %v1063_v45 = vmul.u32 2146121005, %v1031_v25  ;;  %v1032_v39 = vxor.u32 %v1000_v26, %v968_v9  ;;  %v1218_v50 = vxor.u32 %v1186_v32, %v1154_v14  ;;  %v829_v52 = vadd.s32 176, %v1783_v19 }
 0x227   :  { %v1276_v47 = vmul.f32 1.1111112, %v704_v37  ;;  %v707_v49 = vadd.f32 %v1456_v38, %v1904_v40  ;;  %v1219_v54 = vxor.u32 %v1187_v3, %v1155_v61  ;;  %v1157_v53 = vmul.u32 2221713035, %v1125_v30 }
 0x228   :  { %v1094_v55 = vshrl.u32 %v1062_v34, 15  ;;  %v1033_v56 = vxor.u32 %v1001_v35, %v969_v16  ;;  %v830_v60 = vadd.s32 184, %v1783_v19  ;;  %v1095_v63 = vshrl.u32 %v1063_v45, 15 }
 0x229   :  { %v1308_v57 = vsel %vm1244_vm6, %v1276_v47, 0.0  ;;  %v1277_v42 = vmul.f32 1.1111112, %v707_v49  ;;  %v1457_v58 = vpop.f32.mrb[16].mxu1  ;;  %v1064_v1 = vmul.u32 2146121005, %v1032_v39  ;;  %v970_v2 = vxor.u32 %v1869_v10, %v927_v46 }
 0x22a   :  { %1340 = vst [vmem:[#allocation10 + $0x30] sm:$0xff] %v1308_v57  ;;  %v1458_v62 = vpop.f32.mrb[17].mxu1  ;;  %vm1250_vm12 = vcmp.ge.u32.totalorder %v1218_v50, 429496729  ;;  %v1126_v7 = vxor.u32 %v1094_v55, %v1062_v34  ;;  %v1065_v8 = vmul.u32 2146121005, %v1033_v56  ;;  %v1127_v18 = vxor.u32 %v1095_v63, %v1063_v45 }
 0x22b   :  { %v1309_v23 = vsel %vm1245_vm7, %v1277_v42, 0.0  ;;  %v1459_v51 = vadd.f32 %v1458_v62, %v1457_v58  ;;  %v1460_v5 = vpop.f32.mrb[18].mxu1  ;;  %v928_v58 = vadd.s32 %v896_v41, %v1863_v24  ;;  %v1188_v62 = vshrl.u32 %v1156_v44, 16 }
 0x22c   :  { %1341 = vst [vmem:[#allocation10 + $0x38] sm:$0xff] %v1309_v23  ;;  %v1461_v6 = vpop.f32.mrb[19].mxu1  ;;  %v898_v14 = vmul.u32 128, %v830_v60  ;;  %vm1251_vm13 = vcmp.ge.u32.totalorder %v1219_v54, 429496729  ;;  %v1002_v15 = vshrl.u32 %v970_v2, 16 }
 0x22d   :  { %v712_v12 = vadd.f32 %v1459_v51, %v1904_v40  ;;  %v1462_v13 = vadd.f32 %v1461_v6, %v1460_v5  ;;  %v897_v5 = vmul.u32 128, %v829_v52  ;;  %v1189_v6 = vshrl.u32 %v1157_v53, 16 }
 0x22e   :  { %v1220_v59 = vxor.u32 %v1188_v62, %v1156_v44  ;;  %v1158_v21 = vmul.u32 2221713035, %v1126_v7  ;;  %v1097_v25 = vshrl.u32 %v1065_v8, 15  ;;  %v831_v26 = vadd.s32 192, %v1783_v19 }
 0x22f   :  { %v1278_v17 = vmul.f32 1.1111112, %v712_v12  ;;  %v715_v20 = vadd.f32 %v1462_v13, %v1904_v40  ;;  %v971_v13 = vxor.u32 %v1869_v10, %v928_v58  ;;  %v929_v22 = vadd.s32 %v897_v5, %v1863_v24 }
 0x230   :  { %v1221_v0 = vxor.u32 %v1189_v6, %v1157_v53  ;;  %vm1252_vm14 = vcmp.ge.u32.totalorder %v1220_v59, 429496729  ;;  %v1159_v32 = vmul.u32 2221713035, %v1127_v18  ;;  %v832_v3 = vadd.s32 200, %v1783_v19 }
 0x231   :  { %v1310_v28 = vsel %vm1246_vm8, %v1278_v17, 0.0  ;;  %v1279_v29 = vmul.f32 1.1111112, %v715_v20  ;;  %v1463_v31 = vpop.f32.mrb[20].mxu1  ;;  %v1096_v20 = vshrl.u32 %v1064_v1, 15  ;;  %v1190_v41 = vshrl.u32 %v1158_v21, 16 }
 0x232   :  { %1342 = vst [vmem:[#allocation10 + $0x40] sm:$0xff] %v1310_v28  ;;  %v1464_v33 = vpop.f32.mrb[21].mxu1  ;;  %vm1253_vm15 = vcmp.ge.u32.totalorder %v1221_v0, 429496729  ;;  %v899_v44 = vmul.u32 128, %v831_v26  ;;  %v1191_v52 = vshrl.u32 %v1159_v32, 16 }
 0x233   :  { %v1311_v36 = vsel %vm1247_vm9, %v1279_v29, 0.0  ;;  %v1465_v37 = vadd.f32 %v1464_v33, %v1463_v31  ;;  %v1466_v38 = vpop.f32.mrb[22].mxu1  ;;  %v1003_v29 = vshrl.u32 %v971_v13, 16  ;;  %v930_v31 = vadd.s32 %v898_v14, %v1863_v24 }
 0x234   :  { %1343 = vst [vmem:[#allocation10 + $0x48] sm:$0xff] %v1311_v36  ;;  %v1467_v43 = vpop.f32.mrb[23].mxu1  ;;  %v1034_v33 = vxor.u32 %v1002_v15, %v970_v2  ;;  %v1128_v36 = vxor.u32 %v1096_v20, %v1064_v1  ;;  %v900_v55 = vmul.u32 128, %v832_v3  ;;  %v1222_v60 = vxor.u32 %v1190_v41, %v1158_v21 }
 0x235   :  { %v720_v47 = vadd.f32 %v1465_v37, %v1904_v40  ;;  %v1468_v49 = vadd.f32 %v1467_v43, %v1466_v38  ;;  %v972_v37 = vxor.u32 %v1869_v10, %v929_v22  ;;  %v1129_v43 = vxor.u32 %v1097_v25, %v1065_v8 }
 0x236   :  { %v1066_v53 = vmul.u32 2146121005, %v1034_v33  ;;  %v931_v54 = vadd.s32 %v899_v44, %v1863_v24  ;;  %v833_v63 = vadd.s32 208, %v1783_v19  ;;  %v834_v6 = vadd.s32 216, %v1783_v19 }
 0x237   :  { %v1280_v57 = vmul.f32 1.1111112, %v720_v47  ;;  %v723_v42 = vadd.f32 %v1468_v49, %v1904_v40  ;;  %v1035_v47 = vxor.u32 %v1003_v29, %v971_v13  ;;  %v973_v49 = vxor.u32 %v1869_v10, %v930_v31 }
 0x238   :  { %v1004_v58 = vshrl.u32 %v972_v37, 16  ;;  %v1161_v62 = vmul.u32 2221713035, %v1129_v43  ;;  %v1098_v5 = vshrl.u32 %v1066_v53, 15  ;;  %vm1254_vm0 = vcmp.ge.u32.totalorder %v1222_v60, 429496729 }
 0x239   :  { %v1312_v4 = vsel %vm1248_vm10, %v1280_v57, 0.0  ;;  %v1281_v23 = vmul.f32 1.1111112, %v723_v42  ;;  %v1469_v51 = vpop.f32.mrb[24].mxu1  ;;  %v1160_v42 = vmul.u32 2221713035, %v1128_v36 }
 0x23a   :  { %1344 = vst [vmem:[#allocation10 + $0x50] sm:$0xff] %v1312_v4  ;;  %v1470_v48 = vpop.f32.mrb[25].mxu1  ;;  %v1067_v4 = vmul.u32 2146121005, %v1035_v47  ;;  %v1193_v14 = vshrl.u32 %v1161_v62, 16  ;;  %v901_v18 = vmul.u32 128, %v833_v63  ;;  %v1130_v21 = vxor.u32 %v1098_v5, %v1066_v53 }
 0x23b   :  { %v1313_v9 = vsel %vm1249_vm11, %v1281_v23, 0.0  ;;  %v1471_v11 = vadd.f32 %v1470_v48, %v1469_v51  ;;  %v1472_v12 = vpop.f32.mrb[26].mxu1  ;;  %v1005_v23 = vshrl.u32 %v973_v49, 16  ;;  %v1223_v51 = vxor.u32 %v1191_v52, %v1159_v32 }
 0x23c   :  { %1345 = vst [vmem:[#allocation10 + $0x58] sm:$0xff] %v1313_v9  ;;  %v1473_v61 = vpop.f32.mrb[27].mxu1  ;;  %v932_v48 = vadd.s32 %v900_v55, %v1863_v24  ;;  %v1099_v20 = vshrl.u32 %v1067_v4, 15  ;;  %v902_v26 = vmul.u32 128, %v834_v6  ;;  %v1225_v32 = vxor.u32 %v1193_v14, %v1161_v62 }
 0x23d   :  { %v728_v16 = vadd.f32 %v1471_v11, %v1904_v40  ;;  %v1474_v17 = vadd.f32 %v1473_v61, %v1472_v12  ;;  %v1192_v11 = vshrl.u32 %v1160_v42, 16  ;;  %v1036_v12 = vxor.u32 %v1004_v58, %v972_v37 }
 0x23e   :  { %v974_v61 = vxor.u32 %v1869_v10, %v931_v54  ;;  %v1037_v22 = vxor.u32 %v1005_v23, %v973_v49  ;;  %vm1255_vm1 = vcmp.ge.u32.totalorder %v1223_v51, 429496729  ;;  %v975_v25 = vxor.u32 %v1869_v10, %v932_v48 }
 0x23f   :  { %v1282_v27 = vmul.f32 1.1111112, %v728_v16  ;;  %v731_v28 = vadd.f32 %v1474_v17, %v1904_v40  ;;  %v1224_v29 = vxor.u32 %v1192_v11, %v1160_v42  ;;  %v1068_v31 = vmul.u32 2146121005, %v1036_v12 }
 0x240   :  { %v1006_v33 = vshrl.u32 %v974_v61, 16  ;;  %v933_v0 = vadd.s32 %v901_v18, %v1863_v24  ;;  %v835_v3 = vadd.s32 224, %v1783_v19  ;;  %v1069_v36 = vmul.u32 2146121005, %v1037_v22 }
 0x241   :  { %v1314_v30 = vsel %vm1250_vm12, %v1282_v27, 0.0  ;;  %v1283_v34 = vmul.f32 1.1111112, %v731_v28  ;;  %v1475_v35 = vpop.f32.mrb[28].mxu1  ;;  %v1162_v37 = vmul.u32 2221713035, %v1130_v21  ;;  %v934_v41 = vadd.s32 %v902_v26, %v1863_v24 }
 0x242   :  { %1346 = vst [vmem:[#allocation10 + $0x60] sm:$0xff] %v1314_v30  ;;  %v1476_v38 = vpop.f32.mrb[29].mxu1  ;;  %v836_v43 = vadd.s32 232, %v1783_v19  ;;  %vm1256_vm2 = vcmp.ge.u32.totalorder %v1224_v29, 429496729  ;;  %v1038_v49 = vxor.u32 %v1006_v33, %v974_v61  ;;  %v903_v52 = vmul.u32 128, %v835_v3 }
 0x243   :  { %v1315_v45 = vsel %vm1251_vm13, %v1283_v34, 0.0  ;;  %v1477_v39 = vadd.f32 %v1476_v38, %v1475_v35  ;;  %v1478_v46 = vpop.f32.mrb[30].mxu1  ;;  %v1131_v35 = vxor.u32 %v1099_v20, %v1067_v4  ;;  %v1007_v38 = vshrl.u32 %v975_v25, 16 }
 0x244   :  { %1347 = vst [vmem:[#allocation10 + $0x68] sm:$0xff] %v1315_v45  ;;  %v1479_v50 = vpop.f32.mrb[31].mxu1  ;;  %v1101_v42 = vshrl.u32 %v1069_v36, 15  ;;  %vm1257_vm3 = vcmp.ge.u32.totalorder %v1225_v32, 429496729  ;;  %v977_v62 = vxor.u32 %v1869_v10, %v934_v41  ;;  %v904_v54 = vmul.u32 128, %v836_v43 }
 0x245   :  { %v736_v56 = vadd.f32 %v1477_v39, %v1904_v40  ;;  %v1480_v57 = vadd.f32 %v1479_v50, %v1478_v46  ;;  %v1100_v46 = vshrl.u32 %v1068_v31, 15  ;;  %v976_v50 = vxor.u32 %v1869_v10, %v933_v0 }
 0x246   :  { %v1039_v60 = vxor.u32 %v1007_v38, %v975_v25  ;;  %v1070_v23 = vmul.u32 2146121005, %v1038_v49  ;;  %v935_v51 = vadd.s32 %v903_v52, %v1863_v24  ;;  %v837_v48 = vadd.s32 240, %v1783_v19 }
 0x247   :  { %v1284_v1 = vmul.f32 1.1111112, %v736_v56  ;;  %v739_v2 = vadd.f32 %v1480_v57, %v1904_v40  ;;  %v1163_v57 = vmul.u32 2221713035, %v1131_v35  ;;  %v1132_v4 = vxor.u32 %v1100_v46, %v1068_v31 }
 0x248   :  { %v1008_v5 = vshrl.u32 %v976_v50, 16  ;;  %v1071_v11 = vmul.u32 2146121005, %v1039_v60  ;;  %v1009_v12 = vshrl.u32 %v977_v62, 16  ;;  %v838_v14 = vadd.s32 248, %v1783_v19 }
 0x249   :  { %v1316_v7 = vsel %vm1252_vm14, %v1284_v1, 0.0  ;;  %v1285_v8 = vmul.f32 1.1111112, %v739_v2  ;;  %v1481_v9 = vpop.f32.mrb[32].mxu1  ;;  %v1194_v2 = vshrl.u32 %v1162_v37, 16  ;;  %v1102_v22 = vshrl.u32 %v1070_v23, 15 }
 0x24a   :  { %1348 = vst [vmem:[#allocation10 + $0x70] sm:$0xff] %v1316_v7  ;;  %v1482_v13 = vpop.f32.mrb[33].mxu1  ;;  %v978_v21 = vxor.u32 %v1869_v10, %v935_v51  ;;  %v905_v25 = vmul.u32 128, %v837_v48  ;;  %v1103_v29 = vshrl.u32 %v1071_v11, 15  ;;  %v1041_v0 = vxor.u32 %v1009_v12, %v977_v62 }
 0x24b   :  { %v1317_v15 = vsel %vm1253_vm15, %v1285_v8, 0.0  ;;  %v1483_v16 = vadd.f32 %v1482_v13, %v1481_v9  ;;  %v1484_v17 = vpop.f32.mrb[34].mxu1  ;;  %v1195_v8 = vshrl.u32 %v1163_v57, 16  ;;  %v1133_v9 = vxor.u32 %v1101_v42, %v1069_v36 }
 0x24c   :  { %1349 = vst [vmem:[#allocation10 + $0x78] sm:$0xff] %v1317_v15  ;;  %v1485_v59 = vpop.f32.mrb[35].mxu1  ;;  %v936_v13 = vadd.s32 %v904_v54, %v1863_v24  ;;  %v1010_v32 = vshrl.u32 %v978_v21, 16  ;;  %v937_v41 = vadd.s32 %v905_v25, %v1863_v24  ;;  %v1073_v46 = vmul.u32 2146121005, %v1041_v0 }
 0x24d   :  { %v744_v27 = vadd.f32 %v1483_v16, %v1904_v40  ;;  %v1486_v28 = vadd.f32 %v1485_v59, %v1484_v17  ;;  %v1226_v16 = vxor.u32 %v1194_v2, %v1162_v37  ;;  %v1164_v17 = vmul.u32 2221713035, %v1132_v4 }
 0x24e   :  { %v1040_v59 = vxor.u32 %v1008_v5, %v976_v50  ;;  %v1227_v31 = vxor.u32 %v1195_v8, %v1163_v57  ;;  %v1165_v33 = vmul.u32 2221713035, %v1133_v9  ;;  %v979_v3 = vxor.u32 %v1869_v10, %v936_v13 }
 0x24f   :  { %v1286_v30 = vmul.f32 1.1111112, %v744_v27  ;;  %v747_v34 = vadd.f32 %v1486_v28, %v1904_v40  ;;  %vm1258_vm4 = vcmp.ge.u32.totalorder %v1226_v16, 429496729  ;;  %v1196_v36 = vshrl.u32 %v1164_v17, 16 }
 0x250   :  { %v1134_v37 = vxor.u32 %v1102_v22, %v1070_v23  ;;  %v1072_v38 = vmul.u32 2146121005, %v1040_v59  ;;  %vm1259_vm5 = vcmp.ge.u32.totalorder %v1227_v31, 429496729  ;;  %v980_v60 = vxor.u32 %v1869_v10, %v937_v41 }
 0x251   :  { %v1318_v44 = vsel %vm1254_vm0, %v1286_v30, 0.0  ;;  %v1287_v45 = vmul.f32 1.1111112, %v747_v34  ;;  %v1487_v39 = vpop.f32.mrb[36].mxu1  ;;  %v906_v30 = vmul.u32 128, %v838_v14 }
 0x252   :  { %1350 = vst [vmem:[#allocation10 + $0x80] sm:$0xff] %v1318_v44  ;;  %v1488_v47 = vpop.f32.mrb[37].mxu1  ;;  %v1166_v57 = vmul.u32 2221713035, %v1134_v37  ;;  %v1104_v42 = vshrl.u32 %v1072_v38, 15  ;;  %v1012_v9 = vshrl.u32 %v980_v60, 16 }
 0x253   :  { %v1319_v53 = vsel %vm1255_vm1, %v1287_v45, 0.0  ;;  %v1489_v55 = vadd.f32 %v1488_v47, %v1487_v39  ;;  %v1490_v56 = vpop.f32.mrb[38].mxu1  ;;  %v1197_v45 = vshrl.u32 %v1165_v33, 16  ;;  %v1135_v39 = vxor.u32 %v1103_v29, %v1071_v11 }
 0x254   :  { %1351 = vst [vmem:[#allocation10 + $0x88] sm:$0xff] %v1319_v53  ;;  %v1491_v58 = vpop.f32.mrb[39].mxu1  ;;  %v1011_v47 = vshrl.u32 %v979_v3, 16  ;;  %v938_v49 = vadd.s32 %v906_v30, %v1863_v24  ;;  %v1105_v24 = vshrl.u32 %v1073_v46, 15 }
 0x255   :  { %v752_v63 = vadd.f32 %v1489_v55, %v1904_v40  ;;  %v1492_v1 = vadd.f32 %v1491_v58, %v1490_v56  ;;  %v1228_v55 = vxor.u32 %v1196_v36, %v1164_v17  ;;  %v1042_v58 = vxor.u32 %v1010_v32, %v978_v21 }
 0x256   :  { %v1167_v4 = vmul.u32 2221713035, %v1135_v39  ;;  %v1043_v23 = vxor.u32 %v1011_v47, %v979_v3  ;;  %v981_v5 = vxor.u32 %v1869_v10, %v938_v49  ;;  %v1137_v14 = vxor.u32 %v1105_v24, %v1073_v46 }
 0x257   :  { %v1288_v6 = vmul.f32 1.1111112, %v752_v63  ;;  %v755_v7 = vadd.f32 %v1492_v1, %v1904_v40  ;;  %v1229_v1 = vxor.u32 %v1197_v45, %v1165_v33  ;;  %vm1260_vm6 = vcmp.ge.u32.totalorder %v1228_v55, 429496729 }
 0x258   :  { %v1074_v8 = vmul.u32 2146121005, %v1042_v58  ;;  %v1199_v13 = vshrl.u32 %v1167_v4, 16  ;;  %v1044_v21 = vxor.u32 %v1012_v9, %v980_v60  ;;  %v1169_v33 = vmul.u32 2221713035, %v1137_v14 }
 0x259   :  { %v1320_v61 = vsel %vm1256_vm2, %v1288_v6, 0.0  ;;  %v1289_v18 = vmul.f32 1.1111112, %v755_v7  ;;  %v1493_v15 = vpop.f32.mrb[40].mxu1  ;;  %v1198_v6 = vshrl.u32 %v1166_v57, 16  ;;  %v1136_v7 = vxor.u32 %v1104_v42, %v1072_v38 }
 0x25a   :  { %1352 = vst [vmem:[#allocation10 + $0x90] sm:$0xff] %v1320_v61  ;;  %v1494_v20 = vpop.f32.mrb[41].mxu1  ;;  %vm1261_vm7 = vcmp.ge.u32.totalorder %v1229_v1, 429496729  ;;  %v1075_v61 = vmul.u32 2146121005, %v1043_v23  ;;  %v1231_v31 = vxor.u32 %v1199_v13, %v1167_v4 }
 0x25b   :  { %v1321_v26 = vsel %vm1257_vm3, %v1289_v18, 0.0  ;;  %v1495_v27 = vadd.f32 %v1494_v20, %v1493_v15  ;;  %v1496_v28 = vpop.f32.mrb[42].mxu1  ;;  %v1013_v18 = vshrl.u32 %v981_v5, 16  ;;  %v1230_v20 = vxor.u32 %v1198_v6, %v1166_v57 }
 0x25c   :  { %1353 = vst [vmem:[#allocation10 + $0x98] sm:$0xff] %v1321_v26  ;;  %v1497_v19 = vpop.f32.mrb[43].mxu1  ;;  %v1168_v22 = vmul.u32 2221713035, %v1136_v7  ;;  %v1106_v59 = vshrl.u32 %v1074_v8, 15  ;;  %v1201_v38 = vshrl.u32 %v1169_v33, 16 }
 0x25d   :  { %v760_v34 = vadd.f32 %v1495_v27, %v1904_v40  ;;  %v1498_v35 = vadd.f32 %v1497_v19, %v1496_v28  ;;  %v1107_v19 = vshrl.u32 %v1075_v61, 15  ;;  %v1045_v29 = vxor.u32 %v1013_v18, %v981_v5 }
 0x25e   :  { %vm1262_vm8 = vcmp.ge.u32.totalorder %v1230_v20, 429496729  ;;  %v1200_v30 = vshrl.u32 %v1168_v22, 16  ;;  %vm1263_vm9 = vcmp.ge.u32.totalorder %v1231_v31, 429496729 }
 0x25f   :  { %v1290_v43 = vmul.f32 1.1111112, %v760_v34  ;;  %v763_v44 = vadd.f32 %v1498_v35, %v1904_v40  ;;  %v1138_v34 = vxor.u32 %v1106_v59, %v1074_v8  ;;  %v1076_v35 = vmul.u32 2146121005, %v1044_v21 }
 0x260   :  { %v1139_v32 = vxor.u32 %v1107_v19, %v1075_v61  ;;  %v1077_v41 = vmul.u32 2146121005, %v1045_v29  ;;  %v1232_v46 = vxor.u32 %v1200_v30, %v1168_v22 }
 0x261   :  { %v1322_v50 = vsel %vm1258_vm4, %v1290_v43, 0.0  ;;  %v1291_v52 = vmul.f32 1.1111112, %v763_v44  ;;  %v1499_v53 = vpop.f32.mrb[44].mxu1  ;;  %v1170_v47 = vmul.u32 2221713035, %v1138_v34 }
 0x262   :  { %1354 = vst [vmem:[#allocation10 + $0xa0] sm:$0xff] %v1322_v50  ;;  %v1500_v56 = vpop.f32.mrb[45].mxu1  ;;  %v1108_v49 = vshrl.u32 %v1076_v35, 15  ;;  %v1171_v57 = vmul.u32 2221713035, %v1139_v32  ;;  %v1109_v42 = vshrl.u32 %v1077_v41, 15 }
 0x263   :  { %v1323_v62 = vsel %vm1259_vm5, %v1291_v52, 0.0  ;;  %v1501_v54 = vadd.f32 %v1500_v56, %v1499_v53  ;;  %v1502_v63 = vpop.f32.mrb[46].mxu1  ;;  %v1233_v56 = vxor.u32 %v1201_v38, %v1169_v33  ;;  %vm1264_vm10 = vcmp.ge.u32.totalorder %v1232_v46, 429496729 }
 0x264   :  { %1355 = vst [vmem:[#allocation10 + $0xa8] sm:$0xff] %v1323_v62  ;;  %v1503_v2 = vpop.f32.mrb[47].mxu1  ;;  %v1202_v62 = vshrl.u32 %v1170_v47, 16  ;;  %v1141_v4 = vxor.u32 %v1109_v42, %v1077_v41 }
 0x265   :  { %v768_v51 = vadd.f32 %v1501_v54, %v1904_v40  ;;  %v1504_v48 = vadd.f32 %v1503_v2, %v1502_v63  ;;  %v1140_v54 = vxor.u32 %v1108_v49, %v1076_v35  ;;  %vm1265_vm11 = vcmp.ge.u32.totalorder %v1233_v56, 429496729 }
 0x266   :  { %v1203_v2 = vshrl.u32 %v1171_v57, 16  ;;  %v1173_v13 = vmul.u32 2221713035, %v1141_v4 }
 0x267   :  { %v1292_v11 = vmul.f32 1.1111112, %v768_v51  ;;  %v771_v12 = vadd.f32 %v1504_v48, %v1904_v40  ;;  %v1234_v48 = vxor.u32 %v1202_v62, %v1170_v47  ;;  %v1172_v6 = vmul.u32 2221713035, %v1140_v54 }
 0x269   :  { %v1324_v15 = vsel %vm1260_vm6, %v1292_v11, 0.0  ;;  %v1293_v16 = vmul.f32 1.1111112, %v771_v12  ;;  %v1505_v17 = vpop.f32.mrb[48].mxu1  ;;  %v1235_v12 = vxor.u32 %v1203_v2, %v1171_v57  ;;  %vm1266_vm12 = vcmp.ge.u32.totalorder %v1234_v48, 429496729 }
 0x26a   :  { %1356 = vst [vmem:[#allocation10 + $0xb0] sm:$0xff] %v1324_v15  ;;  %v1506_v10 = vpop.f32.mrb[49].mxu1  ;;  %v1204_v18 = vshrl.u32 %v1172_v6, 16 }
 0x26b   :  { %v1325_v25 = vsel %vm1261_vm7, %v1293_v16, 0.0  ;;  %v1507_v26 = vadd.f32 %v1506_v10, %v1505_v17  ;;  %v1508_v27 = vpop.f32.mrb[50].mxu1  ;;  %vm1267_vm13 = vcmp.ge.u32.totalorder %v1235_v12, 429496729  ;;  %v1205_v17 = vshrl.u32 %v1173_v13, 16 }
 0x26c   :  { %1357 = vst [vmem:[#allocation10 + $0xb8] sm:$0xff] %v1325_v25  ;;  %v1509_v28 = vpop.f32.mrb[51].mxu1  ;;  %v1236_v21 = vxor.u32 %v1204_v18, %v1172_v6 }
 0x26d   :  { %v776_v0 = vadd.f32 %v1507_v26, %v1904_v40  ;;  %v1510_v3 = vadd.f32 %v1509_v28, %v1508_v27  ;;  %v1237_v31 = vxor.u32 %v1205_v17, %v1173_v13 }
 0x26e   :  { %vm1268_vm14 = vcmp.ge.u32.totalorder %v1236_v21, 429496729 }
 0x26f   :  { %v1294_v36 = vmul.f32 1.1111112, %v776_v0  ;;  %v779_v37 = vadd.f32 %v1510_v3, %v1904_v40  ;;  %vm1269_vm15 = vcmp.ge.u32.totalorder %v1237_v31, 429496729 }
 0x271   :  { %v1326_v43 = vsel %vm1262_vm8, %v1294_v36, 0.0  ;;  %v1295_v44 = vmul.f32 1.1111112, %v779_v37  ;;  %v1511_v45 = vpop.f32.mrb[52].mxu1 }
 0x272   :  { %1358 = vst [vmem:[#allocation10 + $0xc0] sm:$0xff] %v1326_v43  ;;  %v1512_v39 = vpop.f32.mrb[53].mxu1 }
 0x273   :  { %v1327_v50 = vsel %vm1263_vm9, %v1295_v44, 0.0  ;;  %v1513_v52 = vadd.f32 %v1512_v39, %v1511_v45  ;;  %v1514_v53 = vpop.f32.mrb[54].mxu1 }
 0x274   :  { %1359 = vst [vmem:[#allocation10 + $0xc8] sm:$0xff] %v1327_v50  ;;  %v1515_v55 = vpop.f32.mrb[55].mxu1 }
 0x275   :  { %v784_v58 = vadd.f32 %v1513_v52, %v1904_v40  ;;  %v1516_v60 = vadd.f32 %v1515_v55, %v1514_v53 }
 0x277   :  { %v1296_v63 = vmul.f32 1.1111112, %v784_v58  ;;  %v787_v1 = vadd.f32 %v1516_v60, %v1904_v40  ;;  %v1578_v40 = vld [vmem:[%s2069_s5] ss:$0 sm:$0xff]  ;;  %s1681_s5 = smov [#allocation10]  }
 0x278   :  { %s1371_s27 = sshll.u32 %s1681_s5, 4  ;;  %s1372_s27 = int_to_ptr.vmem [resolvable:$true] %s1371_s27 }
 0x279   :  { %v1328_v24 = vsel %vm1264_vm10, %v1296_v63, 0.0  ;;  %v1297_v23 = vmul.f32 1.1111112, %v787_v1  ;;  %v1517_v5 = vpop.f32.mrb[56].mxu1  ;;  %s1645_s28 = scalar_lea.vmem %s1372_s27, 4096  ;;  %p1650_p11 = scmp.lt.s32.totalorder %s1372_s27, %s1372_s27 }
 0x27a   :  { %1360 = vst [vmem:[#allocation10 + $0xd0] sm:$0xff] %v1328_v24  ;;  %v1518_v51 = vpop.f32.mrb[57].mxu1  ;;  %p1646_p10 = scmp.ne.s32.totalorder %s1372_s27, %s1645_s28  ;;  %p1651_p12 = scmp.lt.s32.totalorder %s1645_s28, %s1645_s28 }
 0x27b   :  { %v1329_v7 = vsel %vm1265_vm11, %v1297_v23, 0.0  ;;  %v1519_v8 = vadd.f32 %v1518_v51, %v1517_v5  ;;  %v1520_v9 = vpop.f32.mrb[58].mxu1 }
 0x27c   :  { %1361 = vst [vmem:[#allocation10 + $0xd8] sm:$0xff] %v1329_v7  ;;  %v1521_v11 = vpop.f32.mrb[59].mxu1  ;;  %p1652_p13 = por %p1651_p12, %p1650_p11 }
 0x27d   :  { %v792_v14 = vadd.f32 %v1578_v40, %v1519_v8  ;;  %v1522_v61 = vadd.f32 %v1521_v11, %v1520_v9 }
 0x27e   :  { %p1653_p0 = pnand %p1652_p13, %p1646_p10 }
 0x27f   :  { %v1298_v15 = vmul.f32 1.1111112, %v792_v14  ;;  %v795_v16 = vadd.f32 %v1578_v40, %v1522_v61 }
 0x281   :  { %v1330_v10 = vsel %vm1266_vm12, %v1298_v15, 0.0  ;;  %v1299_v20 = vmul.f32 1.1111112, %v795_v16  ;;  %v1523_v22 = vpop.f32.mrb[60].mxu1 }
 0x282   :  { %1362 = vst [vmem:[#allocation10 + $0xe0] sm:$0xff] %v1330_v10  ;;  %v1524_v59 = vpop.f32.mrb[61].mxu1 }
 0x283   :  { %v1331_v25 = vsel %vm1267_vm13, %v1299_v20, 0.0  ;;  %v1525_v26 = vadd.f32 %v1524_v59, %v1523_v22  ;;  %v1526_v27 = vpop.f32.mrb[62].mxu1 }
 0x284   :  { %1363 = vst [vmem:[#allocation10 + $0xe8] sm:$0xff] %v1331_v25  ;;  %v1527_v28 = vpop.f32.mrb[63].mxu1 }
 0x285   :  { %v800_v33 = vadd.f32 %v1578_v40, %v1525_v26  ;;  %v1528_v19 = vadd.f32 %v1527_v28, %v1526_v27 }
 0x287   :  { %v1300_v29 = vmul.f32 1.1111112, %v800_v33  ;;  %v803_v0 = vadd.f32 %v1578_v40, %v1528_v19 }
 0x289   :  { %v1332_v3 = vsel %vm1268_vm14, %v1300_v29, 0.0  ;;  %v1301_v30 = vmul.f32 1.1111112, %v803_v0 }
 0x28a   :  { %1364 = vst [vmem:[#allocation10 + $0xf0] sm:$0xff] %v1332_v3 }
 0x28b   :  { %v1333_v34 = vsel %vm1269_vm15, %v1301_v30, 0.0 }
 0x28c   :  { %1365 = vst [vmem:[#allocation10 + $0xf8] sm:$0xff] %v1333_v34 }
 0x28d   :  { %1656 = shalt.err (!%p1653_p0)
}
 0x28e   :  { %s1657_s7 = scalar_lea.hbm %s2070_s6, 4096 }
 0x28f   :  { %p1658_p1 = scmp.ne.s32.totalorder %s2070_s6, %s1657_s7  ;;  %p1661_p2 = scmp.lt.u32.totalorder %s1657_s7, %s2070_s6 }
 0x291   :  { %p1663_p3 = pnand %p1661_p2, %p1658_p1 }
 0x293   :  { %1666 = shalt.err (!%p1663_p3)
}
 0x294   :  { %1377 = dma.vmem_to_hbm [thread:$0]  %s1372_s27, 4096, %s2070_s6, [#allocation6], %s1675_s9, %s1675_s9, %s1676_s10  }
 0x295   :  { %1671 = dma.done.wait [#allocation6], 4096  }
 0x296   :  { %1672 = vsyncadd [#allocation6], 4294963200 }
 0x297   :  { %1381 = vsyncpa [#allocation5], 1 }
 0x298   :  { %1382 = vsyncpa [#allocation8], 1 }
 0x299   :  { %1383 = vsyncpa [#allocation6], 1 }

</bundles_post_ra>
